<compile_context>
chip_gen: v7x
topology: tpu7x:2x2x1
jax: 0.10.0
libtpu: 0.0.40
codegen_flags: <defaults>
</compile_context>

<pallas_src>
import functools

import jax
import jax.numpy as jnp
from jax.experimental import pallas as pl
from jax.experimental.pallas import tpu as pltpu

MAZE_WIDTH = 7
INPUT_SIZE = 4 * MAZE_WIDTH * MAZE_WIDTH + 2 * MAZE_WIDTH   # 210
HIDDEN_SIZE = 2 * INPUT_SIZE                                # 420
NUM_MOVES = 4
NEG_SLOPE = 0.1

# Lane-dense padded widths (multiples of 128).
IN_PAD = 256    # 210 -> 256
HID_PAD = 512   # 420 -> 512
OUT_PAD = 128   # 4   -> 128

# Max batch tile (rows per grid step).
MAX_TILE_M = 256


def _leaky_relu(x):
    return jnp.where(x > 0, x, NEG_SLOPE * x)


def mlp_kernel(x_ref,
               w1_ref, b1_ref,
               w2_ref, b2_ref,
               w3_ref, b3_ref,
               w4_ref, b4_ref,
               o_ref):
    """(Linear + LeakyReLU) x3 + Linear on one batch tile.

    bf16 operands on the MXU, f32 accumulation; bias-add / LeakyReLU in f32;
    re-cast to bf16 before the next matmul.
    """
    h = x_ref[...]                                                     # bf16 (tile_m, IN_PAD)

    h = jnp.dot(h, w1_ref[...], preferred_element_type=jnp.float32) + b1_ref[...]
    h = _leaky_relu(h).astype(jnp.bfloat16)

    h = jnp.dot(h, w2_ref[...], preferred_element_type=jnp.float32) + b2_ref[...]
    h = _leaky_relu(h).astype(jnp.bfloat16)

    h = jnp.dot(h, w3_ref[...], preferred_element_type=jnp.float32) + b3_ref[...]
    h = _leaky_relu(h).astype(jnp.bfloat16)

    logits = jnp.dot(h, w4_ref[...], preferred_element_type=jnp.float32) + b4_ref[...]
    o_ref[...] = logits.astype(o_ref.dtype)                            # (tile_m, OUT_PAD) f32


@functools.partial(jax.jit, static_argnames=("tile_m",))
def _forward_padded(x, params, *, tile_m):
    """x: [B, INPUT_SIZE] float32 -> padded logits [padded_B, OUT_PAD] float32."""
    (w1, b1, w2, b2, w3, b3, w4, b4) = params
    batch = x.shape[0]

    # Pad batch to a tile multiple and features to the lane-dense width, in bf16.
    padded_b = pl.cdiv(batch, tile_m) * tile_m
    x_pad = jnp.pad(x.astype(jnp.bfloat16),
                    ((0, padded_b - batch), (0, IN_PAD - INPUT_SIZE)))

    grid = (padded_b // tile_m,)
    const = lambda i: (0, 0)        # weights/biases: resident, never re-DMAed

    return pl.pallas_call(
        mlp_kernel,
        out_shape=jax.ShapeDtypeStruct((padded_b, OUT_PAD), jnp.float32),
        grid=grid,
        in_specs=[
            pl.BlockSpec((tile_m, IN_PAD), lambda i: (i, 0)),   # x tile
            pl.BlockSpec((IN_PAD, HID_PAD), const),             # w1
            pl.BlockSpec((1, HID_PAD), const),                  # b1
            pl.BlockSpec((HID_PAD, HID_PAD), const),            # w2
            pl.BlockSpec((1, HID_PAD), const),                  # b2
            pl.BlockSpec((HID_PAD, HID_PAD), const),            # w3
            pl.BlockSpec((1, HID_PAD), const),                  # b3
            pl.BlockSpec((HID_PAD, OUT_PAD), const),            # w4
            pl.BlockSpec((1, OUT_PAD), const),                  # b4
        ],
        out_specs=pl.BlockSpec((tile_m, OUT_PAD), lambda i: (i, 0)),
        compiler_params=pltpu.CompilerParams(
            dimension_semantics=("parallel",)),
    )(x_pad, w1, b1, w2, b2, w3, b3, w4, b4)


def neural_network_forward(x, params):
    """x: [B, INPUT_SIZE] float32 -> logits [B, NUM_MOVES] float32."""
    batch = x.shape[0]
    # tile_m: multiple of 8, at least 8, capped at MAX_TILE_M (avoid padding a
    # tiny batch up to 256 rows of dead compute).
    tile_m = min(MAX_TILE_M, max(8, ((batch + 7) // 8) * 8))
    out = _forward_padded(x, params, tile_m=tile_m)
    return out[:batch, :NUM_MOVES]


def init_params(key):
    """Deterministic synthetic parameters, stored padded.

    Weights: bf16, shape (in_pad, out_pad); biases: f32, shape (1, out_pad).
    (PyTorch nn.Linear stores (out, in) and computes x @ W.T — same math,
    transposed storage; padded rows/columns are zero so they never affect the
    result.)
    """
    sizes = [(INPUT_SIZE, HIDDEN_SIZE, IN_PAD, HID_PAD),
             (HIDDEN_SIZE, HIDDEN_SIZE, HID_PAD, HID_PAD),
             (HIDDEN_SIZE, HIDDEN_SIZE, HID_PAD, HID_PAD),
             (HIDDEN_SIZE, NUM_MOVES, HID_PAD, OUT_PAD)]
    params = []
    keys = jax.random.split(key, 2 * len(sizes))
    for i, (fan_in, fan_out, in_pad, out_pad) in enumerate(sizes):
        scale = 1.0 / jnp.sqrt(jnp.float32(fan_in))
        w = jax.random.uniform(keys[2 * i], (fan_in, fan_out),
                               minval=-scale, maxval=scale, dtype=jnp.float32)
        b = jax.random.uniform(keys[2 * i + 1], (1, fan_out),
                               minval=-scale, maxval=scale, dtype=jnp.float32)
        w_p = jnp.zeros((in_pad, out_pad), jnp.bfloat16)
        w_p = w_p.at[:fan_in, :fan_out].set(w.astype(jnp.bfloat16))
        b_p = jnp.zeros((1, out_pad), jnp.float32)
        b_p = b_p.at[:, :fan_out].set(b)
        params += [w_p, b_p]
    return tuple(params)


def _reference_forward(x, params):
    """Pure-JAX reference mirroring the kernel numerics (bf16 operands, f32 accumulate)."""
    (w1, b1, w2, b2, w3, b3, w4, b4) = params
    hp = jax.lax.Precision.HIGHEST
    f32 = jnp.float32

    h = jnp.pad(x.astype(jnp.bfloat16).astype(f32),
                ((0, 0), (0, IN_PAD - INPUT_SIZE)))
    h = _leaky_relu(jnp.dot(h, w1.astype(f32), precision=hp) + b1)
    h = h.astype(jnp.bfloat16).astype(f32)
    h = _leaky_relu(jnp.dot(h, w2.astype(f32), precision=hp) + b2)
    h = h.astype(jnp.bfloat16).astype(f32)
    h = _leaky_relu(jnp.dot(h, w3.astype(f32), precision=hp) + b3)
    h = h.astype(jnp.bfloat16).astype(f32)
    logits = jnp.dot(h, w4.astype(f32), precision=hp) + b4
    return logits[:, :NUM_MOVES]


if __name__ == "__main__":
    key = jax.random.PRNGKey(0)
    pkey, xkey = jax.random.split(key)

    params = init_params(pkey)
    batch = 8
    x = jax.random.normal(xkey, (batch, INPUT_SIZE), dtype=jnp.float32)

    logits = neural_network_forward(x, params)
    logits = jax.block_until_ready(logits)

    ref = _reference_forward(x, params)
    assert logits.shape == (batch, NUM_MOVES)
    max_err = jnp.max(jnp.abs(logits - ref))
    assert jnp.allclose(logits, ref, atol=3e-3, rtol=3e-3), max_err

    print("KERNEL_OK")
</pallas_src>

<mosaic_0001>
module attributes {stable_mosaic.version = 11 : i64} {
  func.func @mlp_kernel(%arg0: i32, %arg1: memref<8x256xbf16, #tpu.memory_space<vmem>>, %arg2: memref<256x512xbf16, #tpu.memory_space<vmem>>, %arg3: memref<1x512xf32, #tpu.memory_space<vmem>>, %arg4: memref<512x512xbf16, #tpu.memory_space<vmem>>, %arg5: memref<1x512xf32, #tpu.memory_space<vmem>>, %arg6: memref<512x512xbf16, #tpu.memory_space<vmem>>, %arg7: memref<1x512xf32, #tpu.memory_space<vmem>>, %arg8: memref<512x128xbf16, #tpu.memory_space<vmem>>, %arg9: memref<1x128xf32, #tpu.memory_space<vmem>>, %arg10: memref<8x128xf32, #tpu.memory_space<vmem>>) attributes {dimension_semantics = [#tpu.dimension_semantics<parallel>], iteration_bounds = array<i64: 1>, scalar_prefetch = 0 : i64, scratch_operands = 0 : i64, tpu.core_type = #tpu.core_type<tc>, window_params = [{transform_indices = @transform_0, window_bounds = array<i64: 8, 256>}, {pipeline_mode = #tpu.pipeline_mode<synchronous>, transform_indices = @transform_1, window_bounds = array<i64: 256, 512>}, {pipeline_mode = #tpu.pipeline_mode<synchronous>, transform_indices = @transform_2, window_bounds = array<i64: 1, 512>}, {pipeline_mode = #tpu.pipeline_mode<synchronous>, transform_indices = @transform_3, window_bounds = array<i64: 512, 512>}, {pipeline_mode = #tpu.pipeline_mode<synchronous>, transform_indices = @transform_4, window_bounds = array<i64: 1, 512>}, {pipeline_mode = #tpu.pipeline_mode<synchronous>, transform_indices = @transform_5, window_bounds = array<i64: 512, 512>}, {pipeline_mode = #tpu.pipeline_mode<synchronous>, transform_indices = @transform_6, window_bounds = array<i64: 1, 512>}, {pipeline_mode = #tpu.pipeline_mode<synchronous>, transform_indices = @transform_7, window_bounds = array<i64: 512, 128>}, {pipeline_mode = #tpu.pipeline_mode<synchronous>, transform_indices = @transform_8, window_bounds = array<i64: 1, 128>}, {transform_indices = @transform_9, window_bounds = array<i64: 8, 128>}]} {
    %c0 = arith.constant 0 : index
    %c0_0 = arith.constant 0 : index
    %0 = vector.load %arg1[%c0, %c0_0] : memref<8x256xbf16, #tpu.memory_space<vmem>>, vector<8x256xbf16>
    %c0_1 = arith.constant 0 : index
    %c0_2 = arith.constant 0 : index
    %1 = vector.load %arg2[%c0_1, %c0_2] : memref<256x512xbf16, #tpu.memory_space<vmem>>, vector<256x512xbf16>
    %cst = arith.constant dense<0.000000e+00> : vector<8x512xf32>
    %2 = tpu.matmul %0, %1, %cst {dimension_numbers = #tpu.dot_dimension_numbers<[1], [0], [0], [1], [0, 0, 1, 1], [], []>} : vector<8x256xbf16>, vector<256x512xbf16>, vector<8x512xf32> -> vector<8x512xf32>
    %c0_3 = arith.constant 0 : index
    %c0_4 = arith.constant 0 : index
    %3 = vector.load %arg3[%c0_3, %c0_4] : memref<1x512xf32, #tpu.memory_space<vmem>>, vector<1x512xf32>
    %4 = vector.broadcast %3 : vector<1x512xf32> to vector<8x512xf32>
    %5 = arith.addf %2, %4 : vector<8x512xf32>
    %cst_5 = arith.constant 0.000000e+00 : f32
    %6 = vector.broadcast %cst_5 : f32 to vector<8x512xf32>
    %7 = arith.cmpf ogt, %5, %6 : vector<8x512xf32>
    %cst_6 = arith.constant 1.000000e-01 : f32
    %8 = vector.broadcast %cst_6 : f32 to vector<8x512xf32>
    %9 = arith.mulf %8, %5 : vector<8x512xf32>
    %10 = arith.select %7, %5, %9 : vector<8x512xi1>, vector<8x512xf32>
    %11 = arith.truncf %10 : vector<8x512xf32> to vector<8x512xbf16>
    %c0_7 = arith.constant 0 : index
    %c0_8 = arith.constant 0 : index
    %12 = vector.load %arg4[%c0_7, %c0_8] : memref<512x512xbf16, #tpu.memory_space<vmem>>, vector<512x512xbf16>
    %cst_9 = arith.constant dense<0.000000e+00> : vector<8x512xf32>
    %13 = tpu.matmul %11, %12, %cst_9 {dimension_numbers = #tpu.dot_dimension_numbers<[1], [0], [0], [1], [0, 0, 1, 1], [], []>} : vector<8x512xbf16>, vector<512x512xbf16>, vector<8x512xf32> -> vector<8x512xf32>
    %c0_10 = arith.constant 0 : index
    %c0_11 = arith.constant 0 : index
    %14 = vector.load %arg5[%c0_10, %c0_11] : memref<1x512xf32, #tpu.memory_space<vmem>>, vector<1x512xf32>
    %15 = vector.broadcast %14 : vector<1x512xf32> to vector<8x512xf32>
    %16 = arith.addf %13, %15 : vector<8x512xf32>
    %cst_12 = arith.constant 0.000000e+00 : f32
    %17 = vector.broadcast %cst_12 : f32 to vector<8x512xf32>
    %18 = arith.cmpf ogt, %16, %17 : vector<8x512xf32>
    %cst_13 = arith.constant 1.000000e-01 : f32
    %19 = vector.broadcast %cst_13 : f32 to vector<8x512xf32>
    %20 = arith.mulf %19, %16 : vector<8x512xf32>
    %21 = arith.select %18, %16, %20 : vector<8x512xi1>, vector<8x512xf32>
    %22 = arith.truncf %21 : vector<8x512xf32> to vector<8x512xbf16>
    %c0_14 = arith.constant 0 : index
    %c0_15 = arith.constant 0 : index
    %23 = vector.load %arg6[%c0_14, %c0_15] : memref<512x512xbf16, #tpu.memory_space<vmem>>, vector<512x512xbf16>
    %cst_16 = arith.constant dense<0.000000e+00> : vector<8x512xf32>
    %24 = tpu.matmul %22, %23, %cst_16 {dimension_numbers = #tpu.dot_dimension_numbers<[1], [0], [0], [1], [0, 0, 1, 1], [], []>} : vector<8x512xbf16>, vector<512x512xbf16>, vector<8x512xf32> -> vector<8x512xf32>
    %c0_17 = arith.constant 0 : index
    %c0_18 = arith.constant 0 : index
    %25 = vector.load %arg7[%c0_17, %c0_18] : memref<1x512xf32, #tpu.memory_space<vmem>>, vector<1x512xf32>
    %26 = vector.broadcast %25 : vector<1x512xf32> to vector<8x512xf32>
    %27 = arith.addf %24, %26 : vector<8x512xf32>
    %cst_19 = arith.constant 0.000000e+00 : f32
    %28 = vector.broadcast %cst_19 : f32 to vector<8x512xf32>
    %29 = arith.cmpf ogt, %27, %28 : vector<8x512xf32>
    %cst_20 = arith.constant 1.000000e-01 : f32
    %30 = vector.broadcast %cst_20 : f32 to vector<8x512xf32>
    %31 = arith.mulf %30, %27 : vector<8x512xf32>
    %32 = arith.select %29, %27, %31 : vector<8x512xi1>, vector<8x512xf32>
    %33 = arith.truncf %32 : vector<8x512xf32> to vector<8x512xbf16>
    %c0_21 = arith.constant 0 : index
    %c0_22 = arith.constant 0 : index
    %34 = vector.load %arg8[%c0_21, %c0_22] : memref<512x128xbf16, #tpu.memory_space<vmem>>, vector<512x128xbf16>
    %cst_23 = arith.constant dense<0.000000e+00> : vector<8x128xf32>
    %35 = tpu.matmul %33, %34, %cst_23 {dimension_numbers = #tpu.dot_dimension_numbers<[1], [0], [0], [1], [0, 0, 1, 1], [], []>} : vector<8x512xbf16>, vector<512x128xbf16>, vector<8x128xf32> -> vector<8x128xf32>
    %c0_24 = arith.constant 0 : index
    %c0_25 = arith.constant 0 : index
    %36 = vector.load %arg9[%c0_24, %c0_25] : memref<1x128xf32, #tpu.memory_space<vmem>>, vector<1x128xf32>
    %37 = vector.broadcast %36 : vector<1x128xf32> to vector<8x128xf32>
    %38 = arith.addf %35, %37 : vector<8x128xf32>
    %c0_26 = arith.constant 0 : index
    %c0_27 = arith.constant 0 : index
    %39 = vector.load %arg10[%c0_26, %c0_27] : memref<8x128xf32, #tpu.memory_space<vmem>>, vector<8x128xf32>
    tpu.vector_store %arg10[%c0_26, %c0_27], %38 {strides = array<i32>} : memref<8x128xf32, #tpu.memory_space<vmem>>, vector<8x128xf32>,
    return
  }
  func.func @transform_0(%arg0: i32) -> (i32, i32) {
    %c0_i32 = arith.constant 0 : i32
    %c0_i32_0 = arith.constant 0 : i32
    return %arg0, %c0_i32 : i32, i32
  }
  func.func @transform_1(%arg0: i32) -> (i32, i32) {
    %c0_i32 = arith.constant 0 : i32
    %c0_i32_0 = arith.constant 0 : i32
    %c0_i32_1 = arith.constant 0 : i32
    return %c0_i32, %c0_i32_0 : i32, i32
  }
  func.func @transform_2(%arg0: i32) -> (i32, i32) {
    %c0_i32 = arith.constant 0 : i32
    %c0_i32_0 = arith.constant 0 : i32
    %c0_i32_1 = arith.constant 0 : i32
    return %c0_i32, %c0_i32_0 : i32, i32
  }
  func.func @transform_3(%arg0: i32) -> (i32, i32) {
    %c0_i32 = arith.constant 0 : i32
    %c0_i32_0 = arith.constant 0 : i32
    %c0_i32_1 = arith.constant 0 : i32
    return %c0_i32, %c0_i32_0 : i32, i32
  }
  func.func @transform_4(%arg0: i32) -> (i32, i32) {
    %c0_i32 = arith.constant 0 : i32
    %c0_i32_0 = arith.constant 0 : i32
    %c0_i32_1 = arith.constant 0 : i32
    return %c0_i32, %c0_i32_0 : i32, i32
  }
  func.func @transform_5(%arg0: i32) -> (i32, i32) {
    %c0_i32 = arith.constant 0 : i32
    %c0_i32_0 = arith.constant 0 : i32
    %c0_i32_1 = arith.constant 0 : i32
    return %c0_i32, %c0_i32_0 : i32, i32
  }
  func.func @transform_6(%arg0: i32) -> (i32, i32) {
    %c0_i32 = arith.constant 0 : i32
    %c0_i32_0 = arith.constant 0 : i32
    %c0_i32_1 = arith.constant 0 : i32
    return %c0_i32, %c0_i32_0 : i32, i32
  }
  func.func @transform_7(%arg0: i32) -> (i32, i32) {
    %c0_i32 = arith.constant 0 : i32
    %c0_i32_0 = arith.constant 0 : i32
    %c0_i32_1 = arith.constant 0 : i32
    return %c0_i32, %c0_i32_0 : i32, i32
  }
  func.func @transform_8(%arg0: i32) -> (i32, i32) {
    %c0_i32 = arith.constant 0 : i32
    %c0_i32_0 = arith.constant 0 : i32
    %c0_i32_1 = arith.constant 0 : i32
    return %c0_i32, %c0_i32_0 : i32, i32
  }
  func.func @transform_9(%arg0: i32) -> (i32, i32) {
    %c0_i32 = arith.constant 0 : i32
    %c0_i32_0 = arith.constant 0 : i32
    return %arg0, %c0_i32 : i32, i32
  }
}

</mosaic_0001>

<bundles_post_ra>
// kernel: _forward_padded.1
= control target key start
LH: loop header
LB: loop body
LE: loop exit
PB: predicated region body
PF: predicated region fallthrough
CT: control target
= control target key end

     0   :  { %14 = vsyncpa [#allocation3], 0  ;;  %s4173_s0 = inlined_call_operand.vmem [shape: bf16[8,256], index: 0, kind: input, shape index: {}]   ;;  %s4174_s1 = inlined_call_operand.hbm [shape: bf16[256,512], index: 1, kind: input, shape index: {}]   ;;  %s4175_s2 = inlined_call_operand.vmem [shape: f32[1,512], index: 2, kind: input, shape index: {}]   ;;  %s4176_s3 = inlined_call_operand.hbm [shape: bf16[512,512], index: 3, kind: input, shape index: {}]   ;;  %s4177_s4 = inlined_call_operand.vmem [shape: f32[1,512], index: 4, kind: input, shape index: {}]   ;;  %s4178_s5 = inlined_call_operand.hbm [shape: bf16[512,512], index: 5, kind: input, shape index: {}]   ;;  %s4179_s6 = inlined_call_operand.vmem [shape: f32[1,512], index: 6, kind: input, shape index: {}]   ;;  %s4180_s7 = inlined_call_operand.hbm [shape: bf16[512,128], index: 7, kind: input, shape index: {}]   ;;  %s4181_s8 = inlined_call_operand.vmem [shape: f32[1,128], index: 8, kind: input, shape index: {}]   ;;  %s4182_s9 = inlined_call_operand.hbm [shape: f32[8,128], index: 9, kind: output, shape index: {}]  }
   0x1   :  { %15 = vsyncpa [#allocation6], 0 }
   0x2   :  { %16 = vsyncpa [#allocation9], 0 }
   0x3   :  { %17 = vsyncpa [#allocation4], 0  ;;  %s3966_s30 = smov [#allocation5]   ;;  %s3967_s11 = smov [#allocation2]  }
   0x4   :  { %s39_s10 = sshll.u32 %s3966_s30, 4  ;;  %s25_s12 = sshll.u32 %s3967_s11, 4  ;;  %s40_s10 = int_to_ptr.vmem [resolvable:$true] %s39_s10  ;;  %s4025_s12 = int_to_ptr.vmem [resolvable:$true] %s25_s12 }
   0x5   :  { %s3848_s15 = scalar_lea.hbm %s4176_s3, 16384 }
   0x6   :  { %p3849_p0 = scmp.ne.s32.totalorder %s4176_s3, %s3848_s15  ;;  %p3852_p1 = scmp.lt.u32.totalorder %s3848_s15, %s4176_s3 }
   0x8   :  { %p3854_p2 = pnand %p3852_p1, %p3849_p0 }
   0xa   :  { %3857 = shalt.err (!%p3854_p2)
}
   0xb   :  { %s3858_s20 = scalar_lea.vmem %s40_s10, 16384  ;;  %p3863_p4 = scmp.lt.s32.totalorder %s40_s10, %s40_s10 }
   0xc   :  { %p3859_p3 = scmp.ne.s32.totalorder %s40_s10, %s3858_s20  ;;  %p3864_p5 = scmp.lt.s32.totalorder %s3858_s20, %s3858_s20 }
   0xe   :  { %p3865_p6 = por %p3864_p5, %p3863_p4 }
  0x10   :  { %p3866_p7 = pnand %p3865_p6, %p3859_p3 }
  0x12   :  { %3869 = shalt.err (!%p3866_p7)
}
  0x13   :  { %s3968_s21 = smov 256   ;;  %s3969_s22 = smov 16  }
  0x14   :  { %45 = dma.hbm_to_vmem [thread:$0]  %s4176_s3, 16384, %s40_s10, [#allocation6], %s3968_s21, %s3968_s21, %s3969_s22  }
  0x15   :  { %s3870_s27 = scalar_lea.hbm %s4174_s1, 8192 }
  0x16   :  { %p3871_p8 = scmp.ne.s32.totalorder %s4174_s1, %s3870_s27  ;;  %p3874_p9 = scmp.lt.u32.totalorder %s3870_s27, %s4174_s1 }
  0x18   :  { %p3876_p10 = pnand %p3874_p9, %p3871_p8 }
  0x1a   :  { %3879 = shalt.err (!%p3876_p10)
}
  0x1b   :  { %s3880_s13 = scalar_lea.vmem %s4025_s12, 8192  ;;  %p3885_p12 = scmp.lt.s32.totalorder %s4025_s12, %s4025_s12 }
  0x1c   :  { %p3881_p11 = scmp.ne.s32.totalorder %s4025_s12, %s3880_s13  ;;  %p3886_p13 = scmp.lt.s32.totalorder %s3880_s13, %s3880_s13 }
  0x1e   :  { %p3887_p0 = por %p3886_p13, %p3885_p12 }
  0x20   :  { %p3888_p1 = pnand %p3887_p0, %p3881_p11 }
  0x22   :  { %3891 = shalt.err (!%p3888_p1)
}
  0x23   :  { %31 = dma.hbm_to_vmem [thread:$0]  %s4174_s1, 8192, %s4025_s12, [#allocation3], %s3968_s21, %s3968_s21, %s3969_s22  }
  0x24   :  { %s3970_s14 = smov [#allocation7]   ;;  %s3971_s16 = smov [#allocation8]  }
  0x25   :  { %s53_s15 = sshll.u32 %s3970_s14, 4  ;;  %s67_s17 = sshll.u32 %s3971_s16, 4  ;;  %s54_s15 = int_to_ptr.vmem [resolvable:$true] %s53_s15  ;;  %s4062_s17 = int_to_ptr.vmem [resolvable:$true] %s67_s17 }
  0x26   :  { %s3892_s20 = scalar_lea.hbm %s4178_s5, 16384 }
  0x27   :  { %p3893_p2 = scmp.ne.s32.totalorder %s4178_s5, %s3892_s20  ;;  %p3896_p3 = scmp.lt.u32.totalorder %s3892_s20, %s4178_s5 }
  0x29   :  { %p3898_p4 = pnand %p3896_p3, %p3893_p2 }
  0x2b   :  { %3901 = shalt.err (!%p3898_p4)
}
  0x2c   :  { %s3902_s1 = scalar_lea.vmem %s54_s15, 16384  ;;  %p3907_p6 = scmp.lt.s32.totalorder %s54_s15, %s54_s15 }
  0x2d   :  { %p3903_p5 = scmp.ne.s32.totalorder %s54_s15, %s3902_s1  ;;  %p3908_p7 = scmp.lt.s32.totalorder %s3902_s1, %s3902_s1 }
  0x2f   :  { %p3909_p8 = por %p3908_p7, %p3907_p6 }
  0x31   :  { %p3910_p9 = pnand %p3909_p8, %p3903_p5 }
  0x33   :  { %3913 = shalt.err (!%p3910_p9)
}
  0x34   :  { %59 = dma.hbm_to_vmem [thread:$0]  %s4178_s5, 16384, %s54_s15, [#allocation6], %s3968_s21, %s3968_s21, %s3969_s22  }
  0x35   :  { %s3914_s30 = scalar_lea.hbm %s4180_s7, 4096 }
  0x36   :  { %p3915_p10 = scmp.ne.s32.totalorder %s4180_s7, %s3914_s30  ;;  %p3918_p11 = scmp.lt.u32.totalorder %s3914_s30, %s4180_s7 }
  0x38   :  { %p3920_p12 = pnand %p3918_p11, %p3915_p10 }
  0x3a   :  { %3923 = shalt.err (!%p3920_p12)
}
  0x3b   :  { %s3924_s14 = scalar_lea.vmem %s4062_s17, 4096  ;;  %p3929_p0 = scmp.lt.s32.totalorder %s4062_s17, %s4062_s17 }
  0x3c   :  { %p3925_p13 = scmp.ne.s32.totalorder %s4062_s17, %s3924_s14  ;;  %p3930_p1 = scmp.lt.s32.totalorder %s3924_s14, %s3924_s14 }
  0x3e   :  { %p3931_p2 = por %p3930_p1, %p3929_p0 }
  0x40   :  { %p3932_p3 = pnand %p3931_p2, %p3925_p13 }
  0x42   :  { %3935 = shalt.err (!%p3932_p3)
}
  0x43   :  { %s3972_s5 = smov 64   ;;  %s3973_s21 = smov 4  }
  0x44   :  { %73 = dma.hbm_to_vmem [thread:$0]  %s4180_s7, 4096, %s4062_s17, [#allocation9], %s3972_s5, %s3972_s5, %s3973_s21  }
  0x45   :  { %3958 = dma.done.wait [#allocation3], 8192  }
  0x46   :  { %3959 = vsyncadd [#allocation3], 4294959104 }
  0x47   :  { %3960 = dma.done.wait [#allocation6], 32768  }
  0x48   :  { %3961 = vsyncadd [#allocation6], 4294934528 }
  0x49   :  { %3962 = dma.done.wait [#allocation9], 4096  }
  0x4a   :  { %3963 = vsyncadd [#allocation9], 4294963200  ;;  %v3334_v0 = vld [vmem:[#allocation2 + $0x4] ss:$16 sps:$4 sm:$0xff]   ;;  %v3336_v1 = vld [vmem:[#allocation2] ss:$16 sps:$4 sm:$0xff]  }
  0x4b   :  { %503 = vmatprep.subr.bf16.mxu0 %v3334_v0  ;;  %v3337_v2 = vld [vmem:[#allocation2 + $0x24] ss:$16 sps:$4 sm:$0xff]   ;;  %v3339_v3 = vld [vmem:[#allocation2 + $0x20] ss:$16 sps:$4 sm:$0xff]   ;;  %v3381_v14 = vld [vmem:[#allocation2 + $0xc] ss:$16 sps:$4 sm:$0xff]  }
  0x4c   :  { %504 = vmatpush1.bf16.msra.mxu0 %v3336_v1  ;;  %v3340_v4 = vld [vmem:[#allocation2 + $0x44] ss:$16 sps:$4 sm:$0xff]   ;;  %v3342_v5 = vld [vmem:[#allocation2 + $0x40] ss:$16 sps:$4 sm:$0xff]   ;;  %v3384_v16 = vld [vmem:[#allocation2 + $0x8] ss:$16 sps:$4 sm:$0xff]   ;;  %544 = vmatprep.subr.bf16.mxu1 %v3381_v14 }
  0x4d   :  { %505 = vmatprep.subr.bf16.mxu0 %v3337_v2  ;;  %v3343_v6 = vld [vmem:[#allocation2 + $0x64] ss:$16 sps:$4 sm:$0xff]   ;;  %v3345_v7 = vld [vmem:[#allocation2 + $0x60] ss:$16 sps:$4 sm:$0xff]   ;;  %v3387_v19 = vld [vmem:[#allocation2 + $0x2c] ss:$16 sps:$4 sm:$0xff]   ;;  %545 = vmatpush1.bf16.msra.mxu1 %v3384_v16 }
  0x4e   :  { %v3346_v8 = vld [vmem:[#allocation2 + $0x84] ss:$16 sps:$4 sm:$0xff]   ;;  %v3348_v9 = vld [vmem:[#allocation2 + $0x80] ss:$16 sps:$4 sm:$0xff]   ;;  %v3389_v20 = vld [vmem:[#allocation2 + $0x28] ss:$16 sps:$4 sm:$0xff]   ;;  %546 = vmatprep.subr.bf16.mxu1 %v3387_v19 }
  0x4f   :  { %v3349_v10 = vld [vmem:[#allocation2 + $0xa4] ss:$16 sps:$4 sm:$0xff]   ;;  %v3351_v11 = vld [vmem:[#allocation2 + $0xa0] ss:$16 sps:$4 sm:$0xff]   ;;  %v3390_v21 = vld [vmem:[#allocation2 + $0x4c] ss:$16 sps:$4 sm:$0xff]  }
  0x50   :  { %506 = vmatpush1.bf16.msra.mxu0 %v3339_v3  ;;  %v3352_v12 = vld [vmem:[#allocation2 + $0xc4] ss:$16 sps:$4 sm:$0xff]   ;;  %v3354_v13 = vld [vmem:[#allocation2 + $0xc0] ss:$16 sps:$4 sm:$0xff]   ;;  %v3392_v24 = vld [vmem:[#allocation2 + $0x48] ss:$16 sps:$4 sm:$0xff]  }
  0x51   :  { %507 = vmatprep.subr.bf16.mxu0 %v3340_v4  ;;  %v3355_v15 = vld [vmem:[#allocation2 + $0xe4] ss:$16 sps:$4 sm:$0xff]   ;;  %v3357_v22 = vld [vmem:[#allocation2 + $0xe0] ss:$16 sps:$4 sm:$0xff]   ;;  %547 = vmatpush1.bf16.msra.mxu1 %v3389_v20  ;;  %v3393_v25 = vld [vmem:[#allocation2 + $0x6c] ss:$16 sps:$4 sm:$0xff]  }
  0x52   :  { %v4099_v17 = vld [vmem:[%s4173_s0] sm:$0xff]  ;;  %548 = vmatprep.subr.bf16.mxu1 %v3390_v21  ;;  %v3395_v28 = vld [vmem:[#allocation2 + $0x68] ss:$16 sps:$4 sm:$0xff]   ;;  %v3396_v29 = vld [vmem:[#allocation2 + $0x8c] ss:$16 sps:$4 sm:$0xff]   ;;  %s3974_s23 = smov [#allocation10]  }
  0x53   :  { %v2903_v18 = vcombine.high %v4099_v17, %v4099_v17  ;;  %v3358_v23 = vld [vmem:[#allocation2 + $0x104] ss:$16 sps:$4 sm:$0xff]   ;;  %v3360_v26 = vld [vmem:[#allocation2 + $0x100] ss:$16 sps:$4 sm:$0xff]   ;;  %v3398_v32 = vld [vmem:[#allocation2 + $0x88] ss:$16 sps:$4 sm:$0xff]   ;;  %v2902_v58 = vcombine.low %v4099_v17, %v4099_v17 }
  0x54   :  { %508 = vmatpush1.bf16.msra.mxu0 %v3342_v5  ;;  %v3361_v27 = vld [vmem:[#allocation2 + $0x124] ss:$16 sps:$4 sm:$0xff]   ;;  %v3363_v30 = vld [vmem:[#allocation2 + $0x120] ss:$16 sps:$4 sm:$0xff]   ;;  %v3399_v33 = vld [vmem:[#allocation2 + $0xac] ss:$16 sps:$4 sm:$0xff]  }
  0x55   :  { %509 = vmatprep.subr.bf16.mxu0 %v3343_v6  ;;  %535 = vmatprep.mubr.bf16.mxu0 %v2903_v18  ;;  %v3364_v31 = vld [vmem:[#allocation2 + $0x144] ss:$16 sps:$4 sm:$0xff]   ;;  %v3366_v34 = vld [vmem:[#allocation2 + $0x140] ss:$16 sps:$4 sm:$0xff]   ;;  %v3401_v36 = vld [vmem:[#allocation2 + $0xa8] ss:$16 sps:$4 sm:$0xff]  }
  0x56   :  { %576 = vmatprep.mubr.bf16.mxu1 %v2903_v18  ;;  %549 = vmatpush1.bf16.msra.mxu1 %v3392_v24  ;;  %v3367_v35 = vld [vmem:[#allocation2 + $0x164] ss:$16 sps:$4 sm:$0xff]   ;;  %v3402_v37 = vld [vmem:[#allocation2 + $0xcc] ss:$16 sps:$4 sm:$0xff]   ;;  %v3369_v38 = vld [vmem:[#allocation2 + $0x160] ss:$16 sps:$4 sm:$0xff]  }
  0x57   :  { %550 = vmatprep.subr.bf16.mxu1 %v3393_v25  ;;  %v3370_v39 = vld [vmem:[#allocation2 + $0x184] ss:$16 sps:$4 sm:$0xff]   ;;  %v3404_v40 = vld [vmem:[#allocation2 + $0xc8] ss:$16 sps:$4 sm:$0xff]   ;;  %v3405_v41 = vld [vmem:[#allocation2 + $0xec] ss:$16 sps:$4 sm:$0xff]  }
  0x58   :  { %510 = vmatpush1.bf16.msra.mxu0 %v3345_v7  ;;  %v3372_v42 = vld [vmem:[#allocation2 + $0x180] ss:$16 sps:$4 sm:$0xff]   ;;  %v3373_v43 = vld [vmem:[#allocation2 + $0x1a4] ss:$16 sps:$4 sm:$0xff]   ;;  %v3407_v44 = vld [vmem:[#allocation2 + $0xe8] ss:$16 sps:$4 sm:$0xff]  }
  0x59   :  { %511 = vmatprep.subr.bf16.mxu0 %v3346_v8  ;;  %v3408_v45 = vld [vmem:[#allocation2 + $0x10c] ss:$16 sps:$4 sm:$0xff]   ;;  %v3375_v46 = vld [vmem:[#allocation2 + $0x1a0] ss:$16 sps:$4 sm:$0xff]   ;;  %v3376_v47 = vld [vmem:[#allocation2 + $0x1c4] ss:$16 sps:$4 sm:$0xff]  }
  0x5a   :  { %551 = vmatpush1.bf16.msra.mxu1 %v3395_v28  ;;  %v3410_v48 = vld [vmem:[#allocation2 + $0x108] ss:$16 sps:$4 sm:$0xff]   ;;  %v3411_v49 = vld [vmem:[#allocation2 + $0x12c] ss:$16 sps:$4 sm:$0xff]   ;;  %v3378_v50 = vld [vmem:[#allocation2 + $0x1c0] ss:$16 sps:$4 sm:$0xff]  }
  0x5b   :  { %552 = vmatprep.subr.bf16.mxu1 %v3396_v29  ;;  %v3379_v51 = vld [vmem:[#allocation2 + $0x1e4] ss:$16 sps:$4 sm:$0xff]   ;;  %v3413_v52 = vld [vmem:[#allocation2 + $0x128] ss:$16 sps:$4 sm:$0xff]   ;;  %v3414_v53 = vld [vmem:[#allocation2 + $0x14c] ss:$16 sps:$4 sm:$0xff]  }
  0x5c   :  { %512 = vmatpush1.bf16.msra.mxu0 %v3348_v9  ;;  %v3383_v54 = vld [vmem:[#allocation2 + $0x1e0] ss:$16 sps:$4 sm:$0xff]   ;;  %v3416_v55 = vld [vmem:[#allocation2 + $0x148] ss:$16 sps:$4 sm:$0xff]   ;;  %v3434_v56 = vld [vmem:[#allocation5 + $0x4] ss:$16 sps:$4 sm:$0xff]  }
  0x5d   :  { %513 = vmatprep.subr.bf16.mxu0 %v3349_v10  ;;  %v3417_v57 = vld [vmem:[#allocation2 + $0x16c] ss:$16 sps:$4 sm:$0xff]   ;;  %v3419_v59 = vld [vmem:[#allocation2 + $0x168] ss:$16 sps:$4 sm:$0xff]   ;;  %v3432_v60 = vld [vmem:[#allocation5] ss:$16 sps:$4 sm:$0xff]  }
  0x5e   :  { %553 = vmatpush1.bf16.msra.mxu1 %v3398_v32  ;;  %v3440_v61 = vld [vmem:[#allocation5 + $0x24] ss:$16 sps:$4 sm:$0xff]   ;;  %v3420_v62 = vld [vmem:[#allocation2 + $0x18c] ss:$16 sps:$4 sm:$0xff]   ;;  %v3422_v63 = vld [vmem:[#allocation2 + $0x188] ss:$16 sps:$4 sm:$0xff]  }
  0x5f   :  { %554 = vmatprep.subr.bf16.mxu1 %v3399_v33  ;;  %v3438_v0 = vld [vmem:[#allocation5 + $0x20] ss:$16 sps:$4 sm:$0xff]   ;;  %v3446_v1 = vld [vmem:[#allocation5 + $0x44] ss:$16 sps:$4 sm:$0xff]   ;;  %v3423_v2 = vld [vmem:[#allocation2 + $0x1ac] ss:$16 sps:$4 sm:$0xff]  }
  0x60   :  { %514 = vmatpush1.bf16.msra.mxu0 %v3351_v11  ;;  %v3425_v3 = vld [vmem:[#allocation2 + $0x1a8] ss:$16 sps:$4 sm:$0xff]   ;;  %v3444_v4 = vld [vmem:[#allocation5 + $0x40] ss:$16 sps:$4 sm:$0xff]   ;;  %v3452_v5 = vld [vmem:[#allocation5 + $0x64] ss:$16 sps:$4 sm:$0xff]  }
  0x61   :  { %515 = vmatprep.subr.bf16.mxu0 %v3352_v12  ;;  %v3426_v6 = vld [vmem:[#allocation2 + $0x1cc] ss:$16 sps:$4 sm:$0xff]   ;;  %v3428_v7 = vld [vmem:[#allocation2 + $0x1c8] ss:$16 sps:$4 sm:$0xff]   ;;  %v3450_v8 = vld [vmem:[#allocation5 + $0x60] ss:$16 sps:$4 sm:$0xff]  }
  0x62   :  { %555 = vmatpush1.bf16.msra.mxu1 %v3401_v36  ;;  %v3458_v9 = vld [vmem:[#allocation5 + $0x84] ss:$16 sps:$4 sm:$0xff]   ;;  %v3429_v10 = vld [vmem:[#allocation2 + $0x1ec] ss:$16 sps:$4 sm:$0xff]   ;;  %v3431_v11 = vld [vmem:[#allocation2 + $0x1e8] ss:$16 sps:$4 sm:$0xff]  }
  0x63   :  { %556 = vmatprep.subr.bf16.mxu1 %v3402_v37  ;;  %v3456_v12 = vld [vmem:[#allocation5 + $0x80] ss:$16 sps:$4 sm:$0xff]   ;;  %v3464_v14 = vld [vmem:[#allocation5 + $0xa4] ss:$16 sps:$4 sm:$0xff]   ;;  %v3435_v16 = vld [vmem:[#allocation5 + $0x8] ss:$16 sps:$4 sm:$0xff]  }
  0x64   :  { %516 = vmatpush1.bf16.msra.mxu0 %v3354_v13  ;;  %v3437_v13 = vld [vmem:[#allocation5 + $0xc] ss:$16 sps:$4 sm:$0xff]   ;;  %v3470_v17 = vld [vmem:[#allocation5 + $0xc4] ss:$16 sps:$4 sm:$0xff]   ;;  %v3468_v19 = vld [vmem:[#allocation5 + $0xc0] ss:$16 sps:$4 sm:$0xff]  }
  0x65   :  { %517 = vmatprep.subr.bf16.mxu0 %v3355_v15  ;;  %v3462_v15 = vld [vmem:[#allocation5 + $0xa0] ss:$16 sps:$4 sm:$0xff]   ;;  %v3443_v18 = vld [vmem:[#allocation5 + $0x2c] ss:$16 sps:$4 sm:$0xff]   ;;  %v3441_v20 = vld [vmem:[#allocation5 + $0x28] ss:$16 sps:$4 sm:$0xff]  }
  0x66   :  { %557 = vmatpush1.bf16.msra.mxu1 %v3404_v40  ;;  %v3476_v21 = vld [vmem:[#allocation5 + $0xe4] ss:$16 sps:$4 sm:$0xff]   ;;  %v3447_v24 = vld [vmem:[#allocation5 + $0x48] ss:$16 sps:$4 sm:$0xff]   ;;  %s2891_s24 = sshll.u32 %s3974_s23, 4  ;;  %s2892_s24 = int_to_ptr.vmem [resolvable:$true] %s2891_s24 }
  0x67   :  { %558 = vmatprep.subr.bf16.mxu1 %v3405_v41  ;;  %v3482_v25 = vld [vmem:[#allocation5 + $0x104] ss:$16 sps:$4 sm:$0xff]   ;;  %v3453_v28 = vld [vmem:[#allocation5 + $0x68] ss:$16 sps:$4 sm:$0xff]   ;;  %s3936_s25 = scalar_lea.vmem %s2892_s24, 128  ;;  %p3941_p5 = scmp.lt.s32.totalorder %s2892_s24, %s2892_s24 }
  0x68   :  { %518 = vmatpush1.bf16.msra.mxu0 %v3357_v22  ;;  %v3449_v22 = vld [vmem:[#allocation5 + $0x4c] ss:$16 sps:$4 sm:$0xff]   ;;  %v3488_v29 = vld [vmem:[#allocation5 + $0x124] ss:$16 sps:$4 sm:$0xff]   ;;  %v3459_v32 = vld [vmem:[#allocation5 + $0x88] ss:$16 sps:$4 sm:$0xff]   ;;  %p3937_p4 = scmp.ne.s32.totalorder %s2892_s24, %s3936_s25  ;;  %p3942_p6 = scmp.lt.s32.totalorder %s3936_s25, %s3936_s25 }
  0x69   :  { %519 = vmatprep.subr.bf16.mxu0 %v3358_v23  ;;  %v3474_v23 = vld [vmem:[#allocation5 + $0xe0] ss:$16 sps:$4 sm:$0xff]   ;;  %v3494_v33 = vld [vmem:[#allocation5 + $0x144] ss:$16 sps:$4 sm:$0xff]   ;;  %v3465_v36 = vld [vmem:[#allocation5 + $0xa8] ss:$16 sps:$4 sm:$0xff]  }
  0x6a   :  { %559 = vmatpush1.bf16.msra.mxu1 %v3407_v44  ;;  %v3500_v37 = vld [vmem:[#allocation5 + $0x164] ss:$16 sps:$4 sm:$0xff]   ;;  %v3471_v40 = vld [vmem:[#allocation5 + $0xc8] ss:$16 sps:$4 sm:$0xff]   ;;  %p3943_p7 = por %p3942_p6, %p3941_p5 }
  0x6b   :  { %560 = vmatprep.subr.bf16.mxu1 %v3408_v45  ;;  %v3506_v41 = vld [vmem:[#allocation5 + $0x184] ss:$16 sps:$4 sm:$0xff]   ;;  %v3477_v44 = vld [vmem:[#allocation5 + $0xe8] ss:$16 sps:$4 sm:$0xff]  }
  0x6c   :  { %520 = vmatpush1.bf16.msra.mxu0 %v3360_v26  ;;  %v3455_v26 = vld [vmem:[#allocation5 + $0x6c] ss:$16 sps:$4 sm:$0xff]   ;;  %v3512_v45 = vld [vmem:[#allocation5 + $0x1a4] ss:$16 sps:$4 sm:$0xff]   ;;  %p3944_p8 = pnand %p3943_p7, %p3937_p4 }
  0x6d   :  { %521 = vmatprep.subr.bf16.mxu0 %v3361_v27  ;;  %v3480_v27 = vld [vmem:[#allocation5 + $0x100] ss:$16 sps:$4 sm:$0xff]  }
  0x6e   :  { %561 = vmatpush1.bf16.msra.mxu1 %v3410_v48  ;;  %v3483_v48 = vld [vmem:[#allocation5 + $0x108] ss:$16 sps:$4 sm:$0xff]  }
  0x6f   :  { %562 = vmatprep.subr.bf16.mxu1 %v3411_v49  ;;  %v3491_v49 = vld [vmem:[#allocation5 + $0x12c] ss:$16 sps:$4 sm:$0xff]  }
  0x70   :  { %522 = vmatpush1.bf16.msra.mxu0 %v3363_v30  ;;  %v3461_v30 = vld [vmem:[#allocation5 + $0x8c] ss:$16 sps:$4 sm:$0xff]  }
  0x71   :  { %523 = vmatprep.subr.bf16.mxu0 %v3364_v31  ;;  %v3486_v31 = vld [vmem:[#allocation5 + $0x120] ss:$16 sps:$4 sm:$0xff]  }
  0x72   :  { %563 = vmatpush1.bf16.msra.mxu1 %v3413_v52  ;;  %v3495_v52 = vld [vmem:[#allocation5 + $0x148] ss:$16 sps:$4 sm:$0xff]  }
  0x73   :  { %564 = vmatprep.subr.bf16.mxu1 %v3414_v53  ;;  %v3503_v53 = vld [vmem:[#allocation5 + $0x16c] ss:$16 sps:$4 sm:$0xff]  }
  0x74   :  { %524 = vmatpush1.bf16.msra.mxu0 %v3366_v34  ;;  %v3467_v34 = vld [vmem:[#allocation5 + $0xac] ss:$16 sps:$4 sm:$0xff]  }
  0x75   :  { %525 = vmatprep.subr.bf16.mxu0 %v3367_v35  ;;  %v3492_v35 = vld [vmem:[#allocation5 + $0x140] ss:$16 sps:$4 sm:$0xff]  }
  0x76   :  { %565 = vmatpush1.bf16.msra.mxu1 %v3416_v55  ;;  %v3509_v55 = vld [vmem:[#allocation5 + $0x18c] ss:$16 sps:$4 sm:$0xff]  }
  0x77   :  { %566 = vmatprep.subr.bf16.mxu1 %v3417_v57  ;;  %v3515_v57 = vld [vmem:[#allocation5 + $0x1ac] ss:$16 sps:$4 sm:$0xff]  }
  0x78   :  { %526 = vmatpush1.bf16.msra.mxu0 %v3369_v38  ;;  %v3473_v38 = vld [vmem:[#allocation5 + $0xcc] ss:$16 sps:$4 sm:$0xff]  }
  0x79   :  { %527 = vmatprep.subr.bf16.mxu0 %v3370_v39  ;;  %v3498_v39 = vld [vmem:[#allocation5 + $0x160] ss:$16 sps:$4 sm:$0xff]  }
  0x7a   :  { %567 = vmatpush1.bf16.msra.mxu1 %v3419_v59  ;;  %v3518_v59 = vld [vmem:[#allocation5 + $0x1c4] ss:$16 sps:$4 sm:$0xff]  }
  0x7b   :  { %568 = vmatprep.subr.bf16.mxu1 %v3420_v62  ;;  %v3519_v62 = vld [vmem:[#allocation5 + $0x1c8] ss:$16 sps:$4 sm:$0xff]  }
  0x7c   :  { %528 = vmatpush1.bf16.msra.mxu0 %v3372_v42  ;;  %v3479_v42 = vld [vmem:[#allocation5 + $0xec] ss:$16 sps:$4 sm:$0xff]  }
  0x7d   :  { %529 = vmatprep.subr.bf16.mxu0 %v3373_v43  ;;  %v3504_v43 = vld [vmem:[#allocation5 + $0x180] ss:$16 sps:$4 sm:$0xff]  }
  0x7e   :  { %569 = vmatpush1.bf16.msra.mxu1 %v3422_v63  ;;  %v3524_v63 = vld [vmem:[#allocation5 + $0x1e4] ss:$16 sps:$4 sm:$0xff]  }
  0x7f   :  { %570 = vmatprep.subr.bf16.mxu1 %v3423_v2  ;;  %v3525_v2 = vld [vmem:[#allocation5 + $0x1e8] ss:$16 sps:$4 sm:$0xff]  }
  0x80   :  { %530 = vmatpush1.bf16.msra.mxu0 %v3375_v46  ;;  %v3485_v46 = vld [vmem:[#allocation5 + $0x10c] ss:$16 sps:$4 sm:$0xff]  }
  0x81   :  { %531 = vmatprep.subr.bf16.mxu0 %v3376_v47  ;;  %v3510_v47 = vld [vmem:[#allocation5 + $0x1a0] ss:$16 sps:$4 sm:$0xff]  }
  0x82   :  { %571 = vmatpush1.bf16.msra.mxu1 %v3425_v3  ;;  %v3530_v3 = vld [vmem:[#allocation5 + $0x204] ss:$16 sps:$4 sm:$0xff]  }
  0x83   :  { %572 = vmatprep.subr.bf16.mxu1 %v3426_v6 }
  0x84   :  { %532 = vmatpush1.bf16.msra.mxu0 %v3378_v50  ;;  %v3489_v50 = vld [vmem:[#allocation5 + $0x128] ss:$16 sps:$4 sm:$0xff]  }
  0x85   :  { %533 = vmatprep.subr.bf16.mxu0 %v3379_v51  ;;  %v3497_v51 = vld [vmem:[#allocation5 + $0x14c] ss:$16 sps:$4 sm:$0xff]  }
  0x86   :  { %573 = vmatpush1.bf16.msra.mxu1 %v3428_v7 }
  0x87   :  { %574 = vmatprep.subr.bf16.mxu1 %v3429_v10 }
  0x88   :  { %534 = vmatpush1.bf16.msra.mxu0 %v3383_v54  ;;  %v3501_v54 = vld [vmem:[#allocation5 + $0x168] ss:$16 sps:$4 sm:$0xff]  }
  0x89   :  { %1391 = vmatprep.subr.bf16.mxu0 %v3434_v56  ;;  %v3507_v56 = vld [vmem:[#allocation5 + $0x188] ss:$16 sps:$4 sm:$0xff]  }
  0x8a   :  { %575 = vmatpush1.bf16.msra.mxu1 %v3431_v11 }
  0x8b   :  { %536 = vmatmul.mubr.bf16.vlgmr.msra.gmra.mrb[0].mxu0 %v2902_v58  ;;  %1473 = vmatprep.subr.bf16.mxu1 %v3437_v13 }
  0x8c   :  { %1392 = vmatpush1.bf16.msra.mxu0 %v3432_v60  ;;  %v3521_v60 = vld [vmem:[#allocation5 + $0x1cc] ss:$16 sps:$4 sm:$0xff]  }
  0x8d   :  { %1393 = vmatprep.subr.bf16.mxu0 %v3440_v61  ;;  %577 = vmatmul.mubr.bf16.vlgmr.msra.gmra.mrb[0].mxu1 %v2902_v58  ;;  %v3513_v58 = vld [vmem:[#allocation5 + $0x1a8] ss:$16 sps:$4 sm:$0xff]   ;;  %v3516_v61 = vld [vmem:[#allocation5 + $0x1c0] ss:$16 sps:$4 sm:$0xff]  }
  0x8e   :  { %1474 = vmatpush1.bf16.msra.mxu1 %v3435_v16 }
  0x8f   :  { %1475 = vmatprep.subr.bf16.mxu1 %v3443_v18 }
  0x90   :  { %1394 = vmatpush1.bf16.msra.mxu0 %v3438_v0  ;;  %v3527_v0 = vld [vmem:[#allocation5 + $0x1ec] ss:$16 sps:$4 sm:$0xff]  }
  0x91   :  { %1395 = vmatprep.subr.bf16.mxu0 %v3446_v1  ;;  %v3522_v1 = vld [vmem:[#allocation5 + $0x1e0] ss:$16 sps:$4 sm:$0xff]  }
  0x92   :  { %1476 = vmatpush1.bf16.msra.mxu1 %v3441_v20 }
  0x93   :  { %1477 = vmatprep.subr.bf16.mxu1 %v3449_v22 }
  0x94   :  { %1396 = vmatpush1.bf16.msra.mxu0 %v3444_v4  ;;  %v3533_v4 = vld [vmem:[#allocation5 + $0x20c] ss:$16 sps:$4 sm:$0xff]  }
  0x95   :  { %1397 = vmatprep.subr.bf16.mxu0 %v3452_v5  ;;  %v156_v5 = vlaneseq }
  0x96   :  { %1478 = vmatpush1.bf16.msra.mxu1 %v3447_v24  ;;  %v3531_v24 = vld [vmem:[#allocation5 + $0x208] ss:$16 sps:$4 sm:$0xff]  }
  0x97   :  { %1479 = vmatprep.subr.bf16.mxu1 %v3455_v26  ;;  %v4105_v6 = vshrl.u32 %v156_v5, 7  ;;  %v3536_v26 = vld [vmem:[#allocation5 + $0x224] ss:$16 sps:$4 sm:$0xff]   ;;  %v3587_v5 = vld [vmem:[#allocation5 + $0x32c] ss:$16 sps:$4 sm:$0xff]  }
  0x98   :  { %1398 = vmatpush1.bf16.msra.mxu0 %v3450_v8  ;;  %v4113_v8 = vld [vmem:[%s4175_s2] sm:$0xf] }
  0x99   :  { %1399 = vmatprep.subr.bf16.mxu0 %v3458_v9  ;;  %v4108_v7 = vsub.s32 0, %v4105_v6  ;;  %v4116_v9 = vsub.s32 1, %v4105_v6 }
  0x9a   :  { %1480 = vmatpush1.bf16.msra.mxu1 %v3453_v28  ;;  %v3534_v28 = vld [vmem:[#allocation5 + $0x220] ss:$16 sps:$4 sm:$0xff]  }
  0x9b   :  { %1481 = vmatprep.subr.bf16.mxu1 %v3461_v30  ;;  %v159_v10 = vrot.slane %v4113_v8, %v4108_v7  ;;  %v163_v11 = vrot.slane %v4113_v8, %v4116_v9  ;;  %v3542_v30 = vld [vmem:[#allocation5 + $0x244] ss:$16 sps:$4 sm:$0xff]  }
  0x9c   :  { %1400 = vmatpush1.bf16.msra.mxu0 %v3456_v12 }
  0x9d   :  { %1401 = vmatprep.subr.bf16.mxu0 %v3464_v14 }
  0x9e   :  { %1482 = vmatpush1.bf16.msra.mxu1 %v3459_v32  ;;  %v3540_v32 = vld [vmem:[#allocation5 + $0x240] ss:$16 sps:$4 sm:$0xff]  }
  0x9f   :  { %1483 = vmatprep.subr.bf16.mxu1 %v3467_v34  ;;  %v4123_v34 = vsub.s32 3, %v4105_v6 }
  0xa0   :  { %1402 = vmatpush1.bf16.msra.mxu0 %v3462_v15 }
  0xa1   :  { %1403 = vmatprep.subr.bf16.mxu0 %v3470_v17 }
  0xa2   :  { %1484 = vmatpush1.bf16.msra.mxu1 %v3465_v36  ;;  %v3551_v36 = vld [vmem:[#allocation5 + $0x26c] ss:$16 sps:$4 sm:$0xff]  }
  0xa3   :  { %1485 = vmatprep.subr.bf16.mxu1 %v3473_v38  ;;  %v3549_v38 = vld [vmem:[#allocation5 + $0x268] ss:$16 sps:$4 sm:$0xff]  }
  0xa4   :  { %1404 = vmatpush1.bf16.msra.mxu0 %v3468_v19 }
  0xa5   :  { %1405 = vmatprep.subr.bf16.mxu0 %v3476_v21 }
  0xa6   :  { %1486 = vmatpush1.bf16.msra.mxu1 %v3471_v40  ;;  %v3554_v40 = vld [vmem:[#allocation5 + $0x284] ss:$16 sps:$4 sm:$0xff]  }
  0xa7   :  { %1487 = vmatprep.subr.bf16.mxu1 %v3479_v42 }
  0xa8   :  { %1406 = vmatpush1.bf16.msra.mxu0 %v3474_v23  ;;  %v3528_v23 = vld [vmem:[#allocation5 + $0x200] ss:$16 sps:$4 sm:$0xff]  }
  0xa9   :  { %1407 = vmatprep.subr.bf16.mxu0 %v3482_v25 }
  0xaa   :  { %1488 = vmatpush1.bf16.msra.mxu1 %v3477_v44  ;;  %v3552_v44 = vld [vmem:[#allocation5 + $0x280] ss:$16 sps:$4 sm:$0xff]  }
  0xab   :  { %1489 = vmatprep.subr.bf16.mxu1 %v3485_v46 }
  0xac   :  { %1408 = vmatpush1.bf16.msra.mxu0 %v3480_v27  ;;  %v3539_v27 = vld [vmem:[#allocation5 + $0x22c] ss:$16 sps:$4 sm:$0xff]  }
  0xad   :  { %1409 = vmatprep.subr.bf16.mxu0 %v3488_v29  ;;  %v3537_v29 = vld [vmem:[#allocation5 + $0x228] ss:$16 sps:$4 sm:$0xff]  }
  0xae   :  { %1490 = vmatpush1.bf16.msra.mxu1 %v3483_v48  ;;  %v3560_v48 = vld [vmem:[#allocation5 + $0x2a4] ss:$16 sps:$4 sm:$0xff]  }
  0xaf   :  { %1491 = vmatprep.subr.bf16.mxu1 %v3491_v49  ;;  %v3563_v49 = vld [vmem:[#allocation5 + $0x2ac] ss:$16 sps:$4 sm:$0xff]  }
  0xb0   :  { %1410 = vmatpush1.bf16.msra.mxu0 %v3486_v31  ;;  %v3545_v31 = vld [vmem:[#allocation5 + $0x24c] ss:$16 sps:$4 sm:$0xff]  }
  0xb1   :  { %1411 = vmatprep.subr.bf16.mxu0 %v3494_v33  ;;  %v3543_v33 = vld [vmem:[#allocation5 + $0x248] ss:$16 sps:$4 sm:$0xff]  }
  0xb2   :  { %1492 = vmatpush1.bf16.msra.mxu1 %v3489_v50 }
  0xb3   :  { %1493 = vmatprep.subr.bf16.mxu1 %v3497_v51 }
  0xb4   :  { %1412 = vmatpush1.bf16.msra.mxu0 %v3492_v35  ;;  %v3548_v35 = vld [vmem:[#allocation5 + $0x264] ss:$16 sps:$4 sm:$0xff]  }
  0xb5   :  { %1413 = vmatprep.subr.bf16.mxu0 %v3500_v37  ;;  %v3546_v37 = vld [vmem:[#allocation5 + $0x260] ss:$16 sps:$4 sm:$0xff]  }
  0xb6   :  { %1494 = vmatpush1.bf16.msra.mxu1 %v3495_v52  ;;  %v3558_v52 = vld [vmem:[#allocation5 + $0x2a0] ss:$16 sps:$4 sm:$0xff]  }
  0xb7   :  { %1495 = vmatprep.subr.bf16.mxu1 %v3503_v53  ;;  %v3561_v53 = vld [vmem:[#allocation5 + $0x2a8] ss:$16 sps:$4 sm:$0xff]  }
  0xb8   :  { %1414 = vmatpush1.bf16.msra.mxu0 %v3498_v39  ;;  %v171_v39 = vrot.slane %v4113_v8, %v4123_v34 }
  0xb9   :  { %1415 = vmatprep.subr.bf16.mxu0 %v3506_v41  ;;  %v3557_v41 = vld [vmem:[#allocation5 + $0x28c] ss:$16 sps:$4 sm:$0xff]  }
  0xba   :  { %1496 = vmatpush1.bf16.msra.mxu1 %v3501_v54 }
  0xbb   :  { %1497 = vmatprep.subr.bf16.mxu1 %v3509_v55  ;;  %v3566_v55 = vld [vmem:[#allocation5 + $0x2c4] ss:$16 sps:$4 sm:$0xff]  }
  0xbc   :  { %1416 = vmatpush1.bf16.msra.mxu0 %v3504_v43 }
  0xbd   :  { %1417 = vmatprep.subr.bf16.mxu0 %v3512_v45  ;;  %v3555_v45 = vld [vmem:[#allocation5 + $0x288] ss:$16 sps:$4 sm:$0xff]  }
  0xbe   :  { %1498 = vmatpush1.bf16.msra.mxu1 %v3507_v56  ;;  %v3569_v56 = vld [vmem:[#allocation5 + $0x2cc] ss:$16 sps:$4 sm:$0xff]  }
  0xbf   :  { %1499 = vmatprep.subr.bf16.mxu1 %v3515_v57 }
  0xc0   :  { %1418 = vmatpush1.bf16.msra.mxu0 %v3510_v47 }
  0xc1   :  { %1419 = vmatprep.subr.bf16.mxu0 %v3518_v59  ;;  %v3567_v59 = vld [vmem:[#allocation5 + $0x2c8] ss:$16 sps:$4 sm:$0xff]  }
  0xc2   :  { %1500 = vmatpush1.bf16.msra.mxu1 %v3513_v58  ;;  %v3564_v58 = vld [vmem:[#allocation5 + $0x2c0] ss:$16 sps:$4 sm:$0xff]  }
  0xc3   :  { %1501 = vmatprep.subr.bf16.mxu1 %v3521_v60  ;;  %v3572_v60 = vld [vmem:[#allocation5 + $0x2e4] ss:$16 sps:$4 sm:$0xff]  }
  0xc4   :  { %1420 = vmatpush1.bf16.msra.mxu0 %v3516_v61  ;;  %v3575_v61 = vld [vmem:[#allocation5 + $0x2ec] ss:$16 sps:$4 sm:$0xff]  }
  0xc5   :  { %1421 = vmatprep.subr.bf16.mxu0 %v3524_v63  ;;  %v3573_v63 = vld [vmem:[#allocation5 + $0x2e8] ss:$16 sps:$4 sm:$0xff]  }
  0xc6   :  { %1502 = vmatpush1.bf16.msra.mxu1 %v3519_v62  ;;  %v3570_v62 = vld [vmem:[#allocation5 + $0x2e0] ss:$16 sps:$4 sm:$0xff]  }
  0xc7   :  { %1503 = vmatprep.subr.bf16.mxu1 %v3527_v0  ;;  %v3578_v0 = vld [vmem:[#allocation5 + $0x304] ss:$16 sps:$4 sm:$0xff]  }
  0xc8   :  { %1422 = vmatpush1.bf16.msra.mxu0 %v3522_v1  ;;  %v3581_v1 = vld [vmem:[#allocation5 + $0x30c] ss:$16 sps:$4 sm:$0xff]  }
  0xc9   :  { %1432 = vmatprep.subr.bf16.mxu0 %v3530_v3  ;;  %v3579_v3 = vld [vmem:[#allocation5 + $0x308] ss:$16 sps:$4 sm:$0xff]  }
  0xca   :  { %1504 = vmatpush1.bf16.msra.mxu1 %v3525_v2  ;;  %v3576_v2 = vld [vmem:[#allocation5 + $0x300] ss:$16 sps:$4 sm:$0xff]  }
  0xcb   :  { %1514 = vmatprep.subr.bf16.mxu1 %v3533_v4  ;;  %v3584_v4 = vld [vmem:[#allocation5 + $0x324] ss:$16 sps:$4 sm:$0xff]  }
 0x15e   :  { %v537_v12 = vpop.f32.mrb[0].mxu0 }
 0x15f   :  { %v538_v13 = vadd.f32 %v537_v12, %v159_v10  ;;  %v539_v14 = vpop.f32.mrb[1].mxu0  ;;  %v3582_v10 = vld [vmem:[#allocation5 + $0x320] ss:$16 sps:$4 sm:$0xff]   ;;  %v3590_v12 = vld [vmem:[#allocation5 + $0x344] ss:$16 sps:$4 sm:$0xff]  }
 0x160   :  { %v540_v15 = vadd.f32 %v539_v14, %v163_v11  ;;  %v541_v16 = vpop.f32.mrb[2].mxu0  ;;  %v4127_v42 = vpop.f32.mrb[0].mxu1  ;;  %v3585_v11 = vld [vmem:[#allocation5 + $0x328] ss:$16 sps:$4 sm:$0xff]   ;;  %v3588_v14 = vld [vmem:[#allocation5 + $0x340] ss:$16 sps:$4 sm:$0xff]  }
 0x161   :  { %vm585_vm0 = vcmp.gt.f32.partialorder %v538_v13, 0.0  ;;  %v589_v17 = vmul.f32 0.1, %v538_v13  ;;  %v542_v18 = vpop.f32.mrb[3].mxu0  ;;  %v580_v43 = vpop.f32.mrb[1].mxu1 }
 0x162   :  { %vm586_vm1 = vcmp.gt.f32.partialorder %v540_v15, 0.0  ;;  %v590_v19 = vmul.f32 0.1, %v540_v15  ;;  %v581_v46 = vadd.f32 %v580_v43, %v171_v39  ;;  %v582_v47 = vpop.f32.mrb[2].mxu1  ;;  %v3596_v16 = vld [vmem:[#allocation5 + $0x364] ss:$16 sps:$4 sm:$0xff]  }
 0x163   :  { %v593_v20 = vsel %vm585_vm0, %v538_v13, %v589_v17  ;;  %v583_v50 = vpop.f32.mrb[3].mxu1  ;;  %v3593_v13 = vld [vmem:[#allocation5 + $0x34c] ss:$16 sps:$4 sm:$0xff]   ;;  %v3594_v18 = vld [vmem:[#allocation5 + $0x360] ss:$16 sps:$4 sm:$0xff]  }
 0x164   :  { %v594_v21 = vsel %vm586_vm1, %v540_v15, %v590_v19  ;;  %v597_v25 = vpack.c.bf16 %v593_v20, %v593_v20  ;;  %vm588_vm2 = vcmp.gt.f32.partialorder %v581_v46, 0.0  ;;  %v592_v51 = vmul.f32 0.1, %v581_v46  ;;  %v3591_v15 = vld [vmem:[#allocation5 + $0x348] ss:$16 sps:$4 sm:$0xff]  }
 0x165   :  { %v598_v22 = vpack.c.bf16 %v594_v21, %v594_v21  ;;  %v3599_v17 = vld [vmem:[#allocation5 + $0x36c] ss:$16 sps:$4 sm:$0xff]   ;;  %v3597_v19 = vld [vmem:[#allocation5 + $0x368] ss:$16 sps:$4 sm:$0xff]   ;;  %v3602_v20 = vld [vmem:[#allocation5 + $0x384] ss:$16 sps:$4 sm:$0xff]  }
 0x166   :  { %v596_v54 = vsel %vm588_vm2, %v581_v46, %v592_v51  ;;  %v3605_v21 = vld [vmem:[#allocation5 + $0x38c] ss:$16 sps:$4 sm:$0xff]   ;;  %v3626_v39 = vld [vmem:[#allocation7 + $0x4] ss:$16 sps:$4 sm:$0xff]   ;;  %v3627_v43 = vld [vmem:[#allocation7 + $0x8] ss:$16 sps:$4 sm:$0xff]  }
 0x167   :  { %1423 = vmatprep.mubr.bf16.mxu0 %v598_v22  ;;  %1505 = vmatprep.mubr.bf16.mxu1 %v598_v22  ;;  %v600_v57 = vpack.c.bf16 %v596_v54, %v596_v54  ;;  %v4130_v22 = vsub.s32 2, %v4105_v6  ;;  %v3617_v6 = vld [vmem:[#allocation5 + $0x3cc] ss:$16 sps:$4 sm:$0xff]   ;;  %v3630_v47 = vld [vmem:[#allocation7 + $0x20] ss:$16 sps:$4 sm:$0xff]  }
 0x168   :  { %1424 = vmatmul.mubr.bf16.vlgmr.msra.gmra.mrb[4].mxu0 %v597_v25  ;;  %1506 = vmatmul.mubr.bf16.vlgmr.msra.gmra.mrb[4].mxu1 %v597_v25  ;;  %v3608_v25 = vld [vmem:[#allocation5 + $0x3a4] ss:$16 sps:$4 sm:$0xff]   ;;  %v3635_v46 = vld [vmem:[#allocation7 + $0x2c] ss:$16 sps:$4 sm:$0xff]   ;;  %v3636_v51 = vld [vmem:[#allocation7 + $0x40] ss:$16 sps:$4 sm:$0xff]  }
 0x169   :  { %1433 = vmatpush1.bf16.msra.mxu0 %v3528_v23  ;;  %1515 = vmatpush1.bf16.msra.mxu1 %v3531_v24  ;;  %v3600_v23 = vld [vmem:[#allocation5 + $0x380] ss:$16 sps:$4 sm:$0xff]   ;;  %v3603_v24 = vld [vmem:[#allocation5 + $0x388] ss:$16 sps:$4 sm:$0xff]   ;;  %v3641_v50 = vld [vmem:[#allocation7 + $0x4c] ss:$16 sps:$4 sm:$0xff]  }
 0x16a   :  { %1434 = vmatprep.subr.bf16.mxu0 %v3536_v26  ;;  %1516 = vmatprep.subr.bf16.mxu1 %v3539_v27  ;;  %v3611_v26 = vld [vmem:[#allocation5 + $0x3ac] ss:$16 sps:$4 sm:$0xff]   ;;  %v167_v27 = vrot.slane %v4113_v8, %v4130_v22  ;;  %v3618_v8 = vld [vmem:[#allocation5 + $0x3e0] ss:$16 sps:$4 sm:$0xff]  }
 0x16b   :  { %1464 = vmatprep.mubr.bf16.mxu0 %v600_v57  ;;  %1546 = vmatprep.mubr.bf16.mxu1 %v600_v57  ;;  %v3647_v54 = vld [vmem:[#allocation7 + $0x6c] ss:$16 sps:$4 sm:$0xff]   ;;  %v3650_v57 = vld [vmem:[#allocation7 + $0x84] ss:$16 sps:$4 sm:$0xff]  }
 0x16d   :  { %1435 = vmatpush1.bf16.msra.mxu0 %v3534_v28  ;;  %1517 = vmatpush1.bf16.msra.mxu1 %v3537_v29  ;;  %v3606_v28 = vld [vmem:[#allocation5 + $0x3a0] ss:$16 sps:$4 sm:$0xff]   ;;  %v3609_v29 = vld [vmem:[#allocation5 + $0x3a8] ss:$16 sps:$4 sm:$0xff]  }
 0x16e   :  { %1436 = vmatprep.subr.bf16.mxu0 %v3542_v30  ;;  %1518 = vmatprep.subr.bf16.mxu1 %v3545_v31  ;;  %v3614_v30 = vld [vmem:[#allocation5 + $0x3c4] ss:$16 sps:$4 sm:$0xff]   ;;  %v579_v31 = vadd.f32 %v4127_v42, %v167_v27  ;;  %v3624_v42 = vld [vmem:[#allocation7] ss:$16 sps:$4 sm:$0xff]   ;;  %v3695_v27 = vld [vmem:[#allocation7 + $0x16c] ss:$16 sps:$4 sm:$0xff]  }
 0x170   :  { %vm587_vm3 = vcmp.gt.f32.partialorder %v579_v31, 0.0 }
 0x171   :  { %1437 = vmatpush1.bf16.msra.mxu0 %v3540_v32  ;;  %1519 = vmatpush1.bf16.msra.mxu1 %v3543_v33  ;;  %v3612_v32 = vld [vmem:[#allocation5 + $0x3c0] ss:$16 sps:$4 sm:$0xff]   ;;  %v3615_v33 = vld [vmem:[#allocation5 + $0x3c8] ss:$16 sps:$4 sm:$0xff]  }
 0x172   :  { %1438 = vmatprep.subr.bf16.mxu0 %v3548_v35  ;;  %1520 = vmatprep.subr.bf16.mxu1 %v3551_v36  ;;  %v3620_v35 = vld [vmem:[#allocation5 + $0x3e4] ss:$16 sps:$4 sm:$0xff]   ;;  %v3623_v36 = vld [vmem:[#allocation5 + $0x3ec] ss:$16 sps:$4 sm:$0xff]  }
 0x175   :  { %1439 = vmatpush1.bf16.msra.mxu0 %v3546_v37  ;;  %1521 = vmatpush1.bf16.msra.mxu1 %v3549_v38  ;;  %v591_v37 = vmul.f32 0.1, %v579_v31  ;;  %v3621_v38 = vld [vmem:[#allocation5 + $0x3e8] ss:$16 sps:$4 sm:$0xff]  }
 0x176   :  { %1440 = vmatprep.subr.bf16.mxu0 %v3554_v40  ;;  %1522 = vmatprep.subr.bf16.mxu1 %v3557_v41  ;;  %v3629_v40 = vld [vmem:[#allocation7 + $0xc] ss:$16 sps:$4 sm:$0xff]  }
 0x177   :  { %v595_v41 = vsel %vm587_vm3, %v579_v31, %v591_v37  ;;  %v3696_v31 = vld [vmem:[#allocation7 + $0x180] ss:$16 sps:$4 sm:$0xff]   ;;  %v3705_v37 = vld [vmem:[#allocation7 + $0x1a8] ss:$16 sps:$4 sm:$0xff]  }
 0x179   :  { %1441 = vmatpush1.bf16.msra.mxu0 %v3552_v44  ;;  %1523 = vmatpush1.bf16.msra.mxu1 %v3555_v45  ;;  %v599_v44 = vpack.c.bf16 %v595_v41, %v595_v41  ;;  %v3632_v45 = vld [vmem:[#allocation7 + $0x24] ss:$16 sps:$4 sm:$0xff]  }
 0x17a   :  { %1442 = vmatprep.subr.bf16.mxu0 %v3560_v48  ;;  %1524 = vmatprep.subr.bf16.mxu1 %v3563_v49  ;;  %v3633_v48 = vld [vmem:[#allocation7 + $0x28] ss:$16 sps:$4 sm:$0xff]   ;;  %v3638_v49 = vld [vmem:[#allocation7 + $0x44] ss:$16 sps:$4 sm:$0xff]  }
 0x17b   :  { %v3716_v41 = vld [vmem:[#allocation7 + $0x1e4] ss:$16 sps:$4 sm:$0xff]  }
 0x17d   :  { %1443 = vmatpush1.bf16.msra.mxu0 %v3558_v52  ;;  %1525 = vmatpush1.bf16.msra.mxu1 %v3561_v53  ;;  %v3639_v52 = vld [vmem:[#allocation7 + $0x48] ss:$16 sps:$4 sm:$0xff]   ;;  %v3644_v53 = vld [vmem:[#allocation7 + $0x64] ss:$16 sps:$4 sm:$0xff]  }
 0x17e   :  { %1444 = vmatprep.subr.bf16.mxu0 %v3566_v55  ;;  %1526 = vmatprep.subr.bf16.mxu1 %v3569_v56  ;;  %v3642_v55 = vld [vmem:[#allocation7 + $0x60] ss:$16 sps:$4 sm:$0xff]   ;;  %v3645_v56 = vld [vmem:[#allocation7 + $0x68] ss:$16 sps:$4 sm:$0xff]  }
 0x181   :  { %1445 = vmatpush1.bf16.msra.mxu0 %v3564_v58  ;;  %1527 = vmatpush1.bf16.msra.mxu1 %v3567_v59  ;;  %v3653_v58 = vld [vmem:[#allocation7 + $0x8c] ss:$16 sps:$4 sm:$0xff]   ;;  %v3648_v59 = vld [vmem:[#allocation7 + $0x80] ss:$16 sps:$4 sm:$0xff]  }
 0x182   :  { %1446 = vmatprep.subr.bf16.mxu0 %v3572_v60  ;;  %1528 = vmatprep.subr.bf16.mxu1 %v3575_v61  ;;  %v3651_v60 = vld [vmem:[#allocation7 + $0x88] ss:$16 sps:$4 sm:$0xff]   ;;  %v3656_v61 = vld [vmem:[#allocation7 + $0xa4] ss:$16 sps:$4 sm:$0xff]  }
 0x185   :  { %1447 = vmatpush1.bf16.msra.mxu0 %v3570_v62  ;;  %1529 = vmatpush1.bf16.msra.mxu1 %v3573_v63  ;;  %v3659_v62 = vld [vmem:[#allocation7 + $0xac] ss:$16 sps:$4 sm:$0xff]   ;;  %v3654_v63 = vld [vmem:[#allocation7 + $0xa0] ss:$16 sps:$4 sm:$0xff]  }
 0x186   :  { %1448 = vmatprep.subr.bf16.mxu0 %v3578_v0  ;;  %1530 = vmatprep.subr.bf16.mxu1 %v3581_v1  ;;  %v3657_v0 = vld [vmem:[#allocation7 + $0xa8] ss:$16 sps:$4 sm:$0xff]   ;;  %v3662_v1 = vld [vmem:[#allocation7 + $0xc4] ss:$16 sps:$4 sm:$0xff]  }
 0x189   :  { %1449 = vmatpush1.bf16.msra.mxu0 %v3576_v2  ;;  %1531 = vmatpush1.bf16.msra.mxu1 %v3579_v3  ;;  %v3665_v2 = vld [vmem:[#allocation7 + $0xcc] ss:$16 sps:$4 sm:$0xff]   ;;  %v3660_v3 = vld [vmem:[#allocation7 + $0xc0] ss:$16 sps:$4 sm:$0xff]  }
 0x18a   :  { %1450 = vmatprep.subr.bf16.mxu0 %v3584_v4  ;;  %1532 = vmatprep.subr.bf16.mxu1 %v3587_v5  ;;  %v3663_v4 = vld [vmem:[#allocation7 + $0xc8] ss:$16 sps:$4 sm:$0xff]   ;;  %v3668_v5 = vld [vmem:[#allocation7 + $0xe4] ss:$16 sps:$4 sm:$0xff]  }
 0x18d   :  { %1451 = vmatpush1.bf16.msra.mxu0 %v3582_v10  ;;  %1533 = vmatpush1.bf16.msra.mxu1 %v3585_v11  ;;  %v3671_v10 = vld [vmem:[#allocation7 + $0xec] ss:$16 sps:$4 sm:$0xff]   ;;  %v3666_v11 = vld [vmem:[#allocation7 + $0xe0] ss:$16 sps:$4 sm:$0xff]  }
 0x18e   :  { %1452 = vmatprep.subr.bf16.mxu0 %v3590_v12  ;;  %1534 = vmatprep.subr.bf16.mxu1 %v3593_v13  ;;  %v3669_v12 = vld [vmem:[#allocation7 + $0xe8] ss:$16 sps:$4 sm:$0xff]   ;;  %v3674_v13 = vld [vmem:[#allocation7 + $0x104] ss:$16 sps:$4 sm:$0xff]  }
 0x191   :  { %1453 = vmatpush1.bf16.msra.mxu0 %v3588_v14  ;;  %1535 = vmatpush1.bf16.msra.mxu1 %v3591_v15  ;;  %v3677_v14 = vld [vmem:[#allocation7 + $0x10c] ss:$16 sps:$4 sm:$0xff]   ;;  %v3672_v15 = vld [vmem:[#allocation7 + $0x100] ss:$16 sps:$4 sm:$0xff]  }
 0x192   :  { %1454 = vmatprep.subr.bf16.mxu0 %v3596_v16  ;;  %1536 = vmatprep.subr.bf16.mxu1 %v3599_v17  ;;  %v3675_v16 = vld [vmem:[#allocation7 + $0x108] ss:$16 sps:$4 sm:$0xff]   ;;  %v3680_v17 = vld [vmem:[#allocation7 + $0x124] ss:$16 sps:$4 sm:$0xff]  }
 0x195   :  { %1455 = vmatpush1.bf16.msra.mxu0 %v3594_v18  ;;  %1537 = vmatpush1.bf16.msra.mxu1 %v3597_v19  ;;  %v3683_v18 = vld [vmem:[#allocation7 + $0x12c] ss:$16 sps:$4 sm:$0xff]   ;;  %v3678_v19 = vld [vmem:[#allocation7 + $0x120] ss:$16 sps:$4 sm:$0xff]  }
 0x196   :  { %1456 = vmatprep.subr.bf16.mxu0 %v3602_v20  ;;  %1538 = vmatprep.subr.bf16.mxu1 %v3605_v21  ;;  %v3681_v20 = vld [vmem:[#allocation7 + $0x128] ss:$16 sps:$4 sm:$0xff]   ;;  %v3686_v21 = vld [vmem:[#allocation7 + $0x144] ss:$16 sps:$4 sm:$0xff]  }
 0x199   :  { %1457 = vmatpush1.bf16.msra.mxu0 %v3600_v23  ;;  %1539 = vmatpush1.bf16.msra.mxu1 %v3603_v24  ;;  %v3689_v23 = vld [vmem:[#allocation7 + $0x14c] ss:$16 sps:$4 sm:$0xff]   ;;  %v3684_v24 = vld [vmem:[#allocation7 + $0x140] ss:$16 sps:$4 sm:$0xff]  }
 0x19a   :  { %1458 = vmatprep.subr.bf16.mxu0 %v3608_v25  ;;  %1540 = vmatprep.subr.bf16.mxu1 %v3611_v26  ;;  %v3687_v25 = vld [vmem:[#allocation7 + $0x148] ss:$16 sps:$4 sm:$0xff]   ;;  %v3692_v26 = vld [vmem:[#allocation7 + $0x164] ss:$16 sps:$4 sm:$0xff]  }
 0x19d   :  { %1459 = vmatpush1.bf16.msra.mxu0 %v3606_v28  ;;  %1541 = vmatpush1.bf16.msra.mxu1 %v3609_v29  ;;  %v3690_v28 = vld [vmem:[#allocation7 + $0x160] ss:$16 sps:$4 sm:$0xff]   ;;  %v3693_v29 = vld [vmem:[#allocation7 + $0x168] ss:$16 sps:$4 sm:$0xff]  }
 0x19e   :  { %1460 = vmatprep.subr.bf16.mxu0 %v3614_v30  ;;  %1542 = vmatprep.subr.bf16.mxu1 %v3617_v6  ;;  %v3698_v30 = vld [vmem:[#allocation7 + $0x184] ss:$16 sps:$4 sm:$0xff]   ;;  %v3701_v6 = vld [vmem:[#allocation7 + $0x18c] ss:$16 sps:$4 sm:$0xff]  }
 0x1a1   :  { %1461 = vmatpush1.bf16.msra.mxu0 %v3612_v32  ;;  %1543 = vmatpush1.bf16.msra.mxu1 %v3615_v33  ;;  %v3699_v32 = vld [vmem:[#allocation7 + $0x188] ss:$16 sps:$4 sm:$0xff]   ;;  %v3704_v33 = vld [vmem:[#allocation7 + $0x1a4] ss:$16 sps:$4 sm:$0xff]  }
 0x1a2   :  { %1462 = vmatprep.subr.bf16.mxu0 %v3620_v35  ;;  %1544 = vmatprep.subr.bf16.mxu1 %v3623_v36  ;;  %v3707_v35 = vld [vmem:[#allocation7 + $0x1ac] ss:$16 sps:$4 sm:$0xff]   ;;  %v3702_v36 = vld [vmem:[#allocation7 + $0x1a0] ss:$16 sps:$4 sm:$0xff]  }
 0x1a5   :  { %1463 = vmatpush1.bf16.msra.mxu0 %v3618_v8  ;;  %1545 = vmatpush1.bf16.msra.mxu1 %v3621_v38  ;;  %v3710_v8 = vld [vmem:[#allocation7 + $0x1c4] ss:$16 sps:$4 sm:$0xff]   ;;  %v3713_v38 = vld [vmem:[#allocation7 + $0x1cc] ss:$16 sps:$4 sm:$0xff]  }
 0x1a6   :  { %2361 = vmatprep.subr.bf16.mxu0 %v3626_v39  ;;  %2443 = vmatprep.subr.bf16.mxu1 %v3629_v40  ;;  %v3708_v39 = vld [vmem:[#allocation7 + $0x1c0] ss:$16 sps:$4 sm:$0xff]   ;;  %v3711_v40 = vld [vmem:[#allocation7 + $0x1c8] ss:$16 sps:$4 sm:$0xff]  }
 0x1a8   :  { %1465 = vmatmul.mubr.bf16.vlgmr.msra.gmra.mrb[4].mxu0 %v599_v44  ;;  %1547 = vmatmul.mubr.bf16.vlgmr.msra.gmra.mrb[4].mxu1 %v599_v44  ;;  %v3717_v44 = vld [vmem:[#allocation7 + $0x1e8] ss:$16 sps:$4 sm:$0xff]  }
 0x1a9   :  { %2362 = vmatpush1.bf16.msra.mxu0 %v3624_v42  ;;  %2444 = vmatpush1.bf16.msra.mxu1 %v3627_v43  ;;  %v3719_v42 = vld [vmem:[#allocation7 + $0x1ec] ss:$16 sps:$4 sm:$0xff]   ;;  %v3714_v43 = vld [vmem:[#allocation7 + $0x1e0] ss:$16 sps:$4 sm:$0xff]  }
 0x1aa   :  { %2363 = vmatprep.subr.bf16.mxu0 %v3632_v45  ;;  %2445 = vmatprep.subr.bf16.mxu1 %v3635_v46  ;;  %v3722_v45 = vld [vmem:[#allocation7 + $0x204] ss:$16 sps:$4 sm:$0xff]   ;;  %v3725_v46 = vld [vmem:[#allocation7 + $0x20c] ss:$16 sps:$4 sm:$0xff]  }
 0x1ad   :  { %2364 = vmatpush1.bf16.msra.mxu0 %v3630_v47  ;;  %2446 = vmatpush1.bf16.msra.mxu1 %v3633_v48  ;;  %v4138_v47 = vld [vmem:[%s4177_s4] sm:$0xf] }
 0x1ae   :  { %2365 = vmatprep.subr.bf16.mxu0 %v3638_v49  ;;  %2447 = vmatprep.subr.bf16.mxu1 %v3641_v50  ;;  %v734_v48 = vrot.slane %v4138_v47, %v4108_v7  ;;  %v738_v49 = vrot.slane %v4138_v47, %v4116_v9  ;;  %v746_v50 = vrot.slane %v4138_v47, %v4123_v34 }
 0x1b1   :  { %2366 = vmatpush1.bf16.msra.mxu0 %v3636_v51  ;;  %2448 = vmatpush1.bf16.msra.mxu1 %v3639_v52 }
 0x1b2   :  { %2367 = vmatprep.subr.bf16.mxu0 %v3644_v53  ;;  %2449 = vmatprep.subr.bf16.mxu1 %v3647_v54 }
 0x1b5   :  { %2368 = vmatpush1.bf16.msra.mxu0 %v3642_v55  ;;  %2450 = vmatpush1.bf16.msra.mxu1 %v3645_v56 }
 0x1b6   :  { %2369 = vmatprep.subr.bf16.mxu0 %v3650_v57  ;;  %2451 = vmatprep.subr.bf16.mxu1 %v3653_v58 }
 0x1b9   :  { %2370 = vmatpush1.bf16.msra.mxu0 %v3648_v59  ;;  %2452 = vmatpush1.bf16.msra.mxu1 %v3651_v60 }
 0x1ba   :  { %2371 = vmatprep.subr.bf16.mxu0 %v3656_v61  ;;  %2453 = vmatprep.subr.bf16.mxu1 %v3659_v62 }
 0x1bd   :  { %2372 = vmatpush1.bf16.msra.mxu0 %v3654_v63  ;;  %2454 = vmatpush1.bf16.msra.mxu1 %v3657_v0 }
 0x1be   :  { %2373 = vmatprep.subr.bf16.mxu0 %v3662_v1  ;;  %2455 = vmatprep.subr.bf16.mxu1 %v3665_v2 }
 0x1c1   :  { %2374 = vmatpush1.bf16.msra.mxu0 %v3660_v3  ;;  %2456 = vmatpush1.bf16.msra.mxu1 %v3663_v4  ;;  %v3720_v4 = vld [vmem:[#allocation7 + $0x200] ss:$16 sps:$4 sm:$0xff]  }
 0x1c2   :  { %2375 = vmatprep.subr.bf16.mxu0 %v3668_v5  ;;  %2457 = vmatprep.subr.bf16.mxu1 %v3671_v10  ;;  %v3723_v5 = vld [vmem:[#allocation7 + $0x208] ss:$16 sps:$4 sm:$0xff]  }
 0x1c5   :  { %2376 = vmatpush1.bf16.msra.mxu0 %v3666_v11  ;;  %2458 = vmatpush1.bf16.msra.mxu1 %v3669_v12  ;;  %v3728_v12 = vld [vmem:[#allocation7 + $0x224] ss:$16 sps:$4 sm:$0xff]  }
 0x1c6   :  { %2377 = vmatprep.subr.bf16.mxu0 %v3674_v13  ;;  %2459 = vmatprep.subr.bf16.mxu1 %v3677_v14  ;;  %v3731_v13 = vld [vmem:[#allocation7 + $0x22c] ss:$16 sps:$4 sm:$0xff]  }
 0x1c9   :  { %2378 = vmatpush1.bf16.msra.mxu0 %v3672_v15  ;;  %2460 = vmatpush1.bf16.msra.mxu1 %v3675_v16  ;;  %v3726_v15 = vld [vmem:[#allocation7 + $0x220] ss:$16 sps:$4 sm:$0xff]   ;;  %v3729_v16 = vld [vmem:[#allocation7 + $0x228] ss:$16 sps:$4 sm:$0xff]  }
 0x1ca   :  { %2379 = vmatprep.subr.bf16.mxu0 %v3680_v17  ;;  %2461 = vmatprep.subr.bf16.mxu1 %v3683_v18  ;;  %v3734_v17 = vld [vmem:[#allocation7 + $0x244] ss:$16 sps:$4 sm:$0xff]   ;;  %v3737_v18 = vld [vmem:[#allocation7 + $0x24c] ss:$16 sps:$4 sm:$0xff]  }
 0x1cd   :  { %2380 = vmatpush1.bf16.msra.mxu0 %v3678_v19  ;;  %2462 = vmatpush1.bf16.msra.mxu1 %v3681_v20  ;;  %v3732_v19 = vld [vmem:[#allocation7 + $0x240] ss:$16 sps:$4 sm:$0xff]   ;;  %v3735_v20 = vld [vmem:[#allocation7 + $0x248] ss:$16 sps:$4 sm:$0xff]  }
 0x1ce   :  { %2381 = vmatprep.subr.bf16.mxu0 %v3686_v21  ;;  %2463 = vmatprep.subr.bf16.mxu1 %v3689_v23  ;;  %v3740_v21 = vld [vmem:[#allocation7 + $0x264] ss:$16 sps:$4 sm:$0xff]   ;;  %v3743_v23 = vld [vmem:[#allocation7 + $0x26c] ss:$16 sps:$4 sm:$0xff]  }
 0x1d1   :  { %2382 = vmatpush1.bf16.msra.mxu0 %v3684_v24  ;;  %2464 = vmatpush1.bf16.msra.mxu1 %v3687_v25  ;;  %v3738_v24 = vld [vmem:[#allocation7 + $0x260] ss:$16 sps:$4 sm:$0xff]   ;;  %v3741_v25 = vld [vmem:[#allocation7 + $0x268] ss:$16 sps:$4 sm:$0xff]  }
 0x1d2   :  { %2383 = vmatprep.subr.bf16.mxu0 %v3692_v26  ;;  %2465 = vmatprep.subr.bf16.mxu1 %v3695_v27  ;;  %v3746_v26 = vld [vmem:[#allocation7 + $0x284] ss:$16 sps:$4 sm:$0xff]   ;;  %v3749_v27 = vld [vmem:[#allocation7 + $0x28c] ss:$16 sps:$4 sm:$0xff]  }
 0x1d5   :  { %2384 = vmatpush1.bf16.msra.mxu0 %v3690_v28  ;;  %2466 = vmatpush1.bf16.msra.mxu1 %v3693_v29  ;;  %v3744_v28 = vld [vmem:[#allocation7 + $0x280] ss:$16 sps:$4 sm:$0xff]   ;;  %v3747_v29 = vld [vmem:[#allocation7 + $0x288] ss:$16 sps:$4 sm:$0xff]  }
 0x1d6   :  { %2385 = vmatprep.subr.bf16.mxu0 %v3698_v30  ;;  %2467 = vmatprep.subr.bf16.mxu1 %v3701_v6  ;;  %v3752_v30 = vld [vmem:[#allocation7 + $0x2a4] ss:$16 sps:$4 sm:$0xff]   ;;  %v3755_v6 = vld [vmem:[#allocation7 + $0x2ac] ss:$16 sps:$4 sm:$0xff]  }
 0x1d9   :  { %2386 = vmatpush1.bf16.msra.mxu0 %v3696_v31  ;;  %2468 = vmatpush1.bf16.msra.mxu1 %v3699_v32  ;;  %v3750_v31 = vld [vmem:[#allocation7 + $0x2a0] ss:$16 sps:$4 sm:$0xff]   ;;  %v3753_v32 = vld [vmem:[#allocation7 + $0x2a8] ss:$16 sps:$4 sm:$0xff]  }
 0x1da   :  { %2387 = vmatprep.subr.bf16.mxu0 %v3704_v33  ;;  %2469 = vmatprep.subr.bf16.mxu1 %v3707_v35  ;;  %v3758_v33 = vld [vmem:[#allocation7 + $0x2c4] ss:$16 sps:$4 sm:$0xff]   ;;  %v3761_v35 = vld [vmem:[#allocation7 + $0x2cc] ss:$16 sps:$4 sm:$0xff]  }
 0x1dd   :  { %2388 = vmatpush1.bf16.msra.mxu0 %v3702_v36  ;;  %2470 = vmatpush1.bf16.msra.mxu1 %v3705_v37  ;;  %v3756_v36 = vld [vmem:[#allocation7 + $0x2c0] ss:$16 sps:$4 sm:$0xff]   ;;  %v3759_v37 = vld [vmem:[#allocation7 + $0x2c8] ss:$16 sps:$4 sm:$0xff]  }
 0x1de   :  { %2389 = vmatprep.subr.bf16.mxu0 %v3710_v8  ;;  %2471 = vmatprep.subr.bf16.mxu1 %v3713_v38  ;;  %v3764_v8 = vld [vmem:[#allocation7 + $0x2e4] ss:$16 sps:$4 sm:$0xff]   ;;  %v3767_v38 = vld [vmem:[#allocation7 + $0x2ec] ss:$16 sps:$4 sm:$0xff]  }
 0x1e1   :  { %2390 = vmatpush1.bf16.msra.mxu0 %v3708_v39  ;;  %2472 = vmatpush1.bf16.msra.mxu1 %v3711_v40  ;;  %v3762_v39 = vld [vmem:[#allocation7 + $0x2e0] ss:$16 sps:$4 sm:$0xff]   ;;  %v3765_v40 = vld [vmem:[#allocation7 + $0x2e8] ss:$16 sps:$4 sm:$0xff]  }
 0x1e2   :  { %2391 = vmatprep.subr.bf16.mxu0 %v3716_v41  ;;  %2473 = vmatprep.subr.bf16.mxu1 %v3719_v42  ;;  %v3770_v41 = vld [vmem:[#allocation7 + $0x304] ss:$16 sps:$4 sm:$0xff]   ;;  %v3773_v42 = vld [vmem:[#allocation7 + $0x30c] ss:$16 sps:$4 sm:$0xff]  }
 0x1e5   :  { %2392 = vmatpush1.bf16.msra.mxu0 %v3714_v43  ;;  %2474 = vmatpush1.bf16.msra.mxu1 %v3717_v44  ;;  %v3768_v43 = vld [vmem:[#allocation7 + $0x300] ss:$16 sps:$4 sm:$0xff]   ;;  %v3771_v44 = vld [vmem:[#allocation7 + $0x308] ss:$16 sps:$4 sm:$0xff]  }
 0x1e6   :  { %2402 = vmatprep.subr.bf16.mxu0 %v3722_v45  ;;  %2484 = vmatprep.subr.bf16.mxu1 %v3725_v46  ;;  %v3776_v45 = vld [vmem:[#allocation7 + $0x324] ss:$16 sps:$4 sm:$0xff]   ;;  %v3779_v46 = vld [vmem:[#allocation7 + $0x32c] ss:$16 sps:$4 sm:$0xff]  }
 0x27b   :  { %v1466_v51 = vpop.f32.mrb[4].mxu0  ;;  %v4146_v52 = vpop.f32.mrb[4].mxu1 }
 0x27c   :  { %v3301_v53 = vadd.f32 %v1466_v51, %v734_v48  ;;  %v1468_v54 = vpop.f32.mrb[5].mxu0  ;;  %v1550_v55 = vpop.f32.mrb[5].mxu1  ;;  %v3774_v48 = vld [vmem:[#allocation7 + $0x320] ss:$16 sps:$4 sm:$0xff]   ;;  %v3785_v51 = vld [vmem:[#allocation7 + $0x34c] ss:$16 sps:$4 sm:$0xff]  }
 0x27d   :  { %v3302_v56 = vadd.f32 %v1468_v54, %v738_v49  ;;  %v3304_v57 = vadd.f32 %v1550_v55, %v746_v50  ;;  %v1470_v58 = vpop.f32.mrb[6].mxu0  ;;  %v1552_v59 = vpop.f32.mrb[6].mxu1  ;;  %v3777_v49 = vld [vmem:[#allocation7 + $0x328] ss:$16 sps:$4 sm:$0xff]   ;;  %v3782_v50 = vld [vmem:[#allocation7 + $0x344] ss:$16 sps:$4 sm:$0xff]  }
 0x27e   :  { %vm1555_vm4 = vcmp.gt.f32.partialorder %v3301_v53, 0.0  ;;  %v1559_v60 = vmul.f32 0.1, %v3301_v53  ;;  %v1471_v0 = vpop.f32.mrb[7].mxu0  ;;  %v1553_v1 = vpop.f32.mrb[7].mxu1 }
 0x27f   :  { %vm1556_vm5 = vcmp.gt.f32.partialorder %v3302_v56, 0.0  ;;  %v1560_v61 = vmul.f32 0.1, %v3302_v56  ;;  %vm1558_vm6 = vcmp.gt.f32.partialorder %v3304_v57, 0.0  ;;  %v1562_v62 = vmul.f32 0.1, %v3304_v57 }
 0x280   :  { %v1563_v63 = vsel %vm1555_vm4, %v3301_v53, %v1559_v60  ;;  %v3780_v53 = vld [vmem:[#allocation7 + $0x340] ss:$16 sps:$4 sm:$0xff]   ;;  %v3783_v54 = vld [vmem:[#allocation7 + $0x348] ss:$16 sps:$4 sm:$0xff]   ;;  %v3788_v55 = vld [vmem:[#allocation7 + $0x364] ss:$16 sps:$4 sm:$0xff]   ;;  %v742_v1 = vrot.slane %v4138_v47, %v4130_v22 }
 0x281   :  { %v1564_v2 = vsel %vm1556_vm5, %v3302_v56, %v1560_v61  ;;  %v1566_v10 = vsel %vm1558_vm6, %v3304_v57, %v1562_v62  ;;  %v1567_v11 = vpack.c.bf16 %v1563_v63, %v1563_v63  ;;  %v3791_v56 = vld [vmem:[#allocation7 + $0x36c] ss:$16 sps:$4 sm:$0xff]   ;;  %v3786_v57 = vld [vmem:[#allocation7 + $0x360] ss:$16 sps:$4 sm:$0xff]   ;;  %v3789_v58 = vld [vmem:[#allocation7 + $0x368] ss:$16 sps:$4 sm:$0xff]  }
 0x282   :  { %v1568_v3 = vpack.c.bf16 %v1564_v2, %v1564_v2  ;;  %v1570_v14 = vpack.c.bf16 %v1566_v10, %v1566_v10  ;;  %v3794_v59 = vld [vmem:[#allocation7 + $0x384] ss:$16 sps:$4 sm:$0xff]   ;;  %v3797_v60 = vld [vmem:[#allocation7 + $0x38c] ss:$16 sps:$4 sm:$0xff]   ;;  %v3792_v61 = vld [vmem:[#allocation7 + $0x380] ss:$16 sps:$4 sm:$0xff]   ;;  %v3303_v10 = vadd.f32 %v4146_v52, %v742_v1 }
 0x283   :  { %v3795_v62 = vld [vmem:[#allocation7 + $0x388] ss:$16 sps:$4 sm:$0xff]   ;;  %v3800_v63 = vld [vmem:[#allocation7 + $0x3a4] ss:$16 sps:$4 sm:$0xff]   ;;  %v3803_v0 = vld [vmem:[#allocation7 + $0x3ac] ss:$16 sps:$4 sm:$0xff]  }
 0x284   :  { %2393 = vmatprep.mubr.bf16.mxu0 %v1568_v3  ;;  %2475 = vmatprep.mubr.bf16.mxu1 %v1568_v3  ;;  %v3798_v2 = vld [vmem:[#allocation7 + $0x3a0] ss:$16 sps:$4 sm:$0xff]   ;;  %v3801_v3 = vld [vmem:[#allocation7 + $0x3a8] ss:$16 sps:$4 sm:$0xff]   ;;  %vm1557_vm7 = vcmp.gt.f32.partialorder %v3303_v10, 0.0 }
 0x285   :  { %2394 = vmatmul.mubr.bf16.vlgmr.msra.gmra.mrb[8].mxu0 %v1567_v11  ;;  %2476 = vmatmul.mubr.bf16.vlgmr.msra.gmra.mrb[8].mxu1 %v1567_v11  ;;  %v3804_v11 = vld [vmem:[#allocation7 + $0x3c0] ss:$16 sps:$4 sm:$0xff]  }
 0x286   :  { %2403 = vmatpush1.bf16.msra.mxu0 %v3720_v4  ;;  %2485 = vmatpush1.bf16.msra.mxu1 %v3723_v5  ;;  %v3806_v4 = vld [vmem:[#allocation7 + $0x3c4] ss:$16 sps:$4 sm:$0xff]   ;;  %v3809_v5 = vld [vmem:[#allocation7 + $0x3cc] ss:$16 sps:$4 sm:$0xff]   ;;  %v3810_v47 = vld [vmem:[#allocation7 + $0x3e0] ss:$16 sps:$4 sm:$0xff]  }
 0x287   :  { %2434 = vmatprep.mubr.bf16.mxu0 %v1570_v14  ;;  %2516 = vmatprep.mubr.bf16.mxu1 %v1570_v14  ;;  %v3815_v14 = vld [vmem:[#allocation7 + $0x3ec] ss:$16 sps:$4 sm:$0xff]   ;;  %v3818_v52 = vld [vmem:[#allocation8] sm:$0xff]  }
 0x288   :  { %2404 = vmatprep.subr.bf16.mxu0 %v3728_v12  ;;  %2486 = vmatprep.subr.bf16.mxu1 %v3731_v13  ;;  %v3807_v12 = vld [vmem:[#allocation7 + $0x3c8] ss:$16 sps:$4 sm:$0xff]   ;;  %v3812_v13 = vld [vmem:[#allocation7 + $0x3e4] ss:$16 sps:$4 sm:$0xff]  }
 0x28a   :  { %2405 = vmatpush1.bf16.msra.mxu0 %v3726_v15  ;;  %2487 = vmatpush1.bf16.msra.mxu1 %v3729_v16  ;;  %v1561_v15 = vmul.f32 0.1, %v3303_v10  ;;  %v3813_v16 = vld [vmem:[#allocation7 + $0x3e8] ss:$16 sps:$4 sm:$0xff]  }
 0x28b   :  { %2406 = vmatprep.subr.bf16.mxu0 %v3734_v17  ;;  %2488 = vmatprep.subr.bf16.mxu1 %v3737_v18  ;;  %v3816_v17 = vld [vmem:[#allocation8 + $0x40] sm:$0xff]  }
 0x28c   :  { %v3817_v18 = vld [vmem:[#allocation8 + $0xc0] sm:$0xff]  }
 0x28e   :  { %2407 = vmatpush1.bf16.msra.mxu0 %v3732_v19  ;;  %2489 = vmatpush1.bf16.msra.mxu1 %v3735_v20  ;;  %v1565_v19 = vsel %vm1557_vm7, %v3303_v10, %v1561_v15  ;;  %v3819_v20 = vld [vmem:[#allocation8 + $0x80] sm:$0xff]  }
 0x28f   :  { %2408 = vmatprep.subr.bf16.mxu0 %v3740_v21  ;;  %2490 = vmatprep.subr.bf16.mxu1 %v3743_v23  ;;  %v1569_v21 = vpack.c.bf16 %v1565_v19, %v1565_v19  ;;  %v3820_v23 = vld [vmem:[#allocation8 + $0x48] sm:$0xff]  }
 0x292   :  { %2409 = vmatpush1.bf16.msra.mxu0 %v3738_v24  ;;  %2491 = vmatpush1.bf16.msra.mxu1 %v3741_v25  ;;  %v3821_v24 = vld [vmem:[#allocation8 + $0xc8] sm:$0xff]  }
 0x293   :  { %2410 = vmatprep.subr.bf16.mxu0 %v3746_v26  ;;  %2492 = vmatprep.subr.bf16.mxu1 %v3749_v27  ;;  %v3822_v25 = vld [vmem:[#allocation8 + $0x8] sm:$0xff]   ;;  %v3824_v27 = vld [vmem:[#allocation8 + $0x50] sm:$0xff]  }
 0x294   :  { %v3823_v26 = vld [vmem:[#allocation8 + $0x88] sm:$0xff]  }
 0x296   :  { %2411 = vmatpush1.bf16.msra.mxu0 %v3744_v28  ;;  %2493 = vmatpush1.bf16.msra.mxu1 %v3747_v29  ;;  %v3825_v28 = vld [vmem:[#allocation8 + $0xd0] sm:$0xff]  }
 0x297   :  { %2412 = vmatprep.subr.bf16.mxu0 %v3752_v30  ;;  %2494 = vmatprep.subr.bf16.mxu1 %v3755_v6  ;;  %v3826_v29 = vld [vmem:[#allocation8 + $0x10] sm:$0xff]   ;;  %v3828_v6 = vld [vmem:[#allocation8 + $0x58] sm:$0xff]  }
 0x298   :  { %v3827_v30 = vld [vmem:[#allocation8 + $0x90] sm:$0xff]  }
 0x29a   :  { %2413 = vmatpush1.bf16.msra.mxu0 %v3750_v31  ;;  %2495 = vmatpush1.bf16.msra.mxu1 %v3753_v32  ;;  %v3829_v31 = vld [vmem:[#allocation8 + $0xd8] sm:$0xff]  }
 0x29b   :  { %2414 = vmatprep.subr.bf16.mxu0 %v3758_v33  ;;  %2496 = vmatprep.subr.bf16.mxu1 %v3761_v35  ;;  %v3830_v32 = vld [vmem:[#allocation8 + $0x18] sm:$0xff]   ;;  %v3832_v35 = vld [vmem:[#allocation8 + $0x60] sm:$0xff]  }
 0x29c   :  { %v3831_v33 = vld [vmem:[#allocation8 + $0x98] sm:$0xff]  }
 0x29e   :  { %2415 = vmatpush1.bf16.msra.mxu0 %v3756_v36  ;;  %2497 = vmatpush1.bf16.msra.mxu1 %v3759_v37  ;;  %v3833_v36 = vld [vmem:[#allocation8 + $0xe0] sm:$0xff]  }
 0x29f   :  { %2416 = vmatprep.subr.bf16.mxu0 %v3764_v8  ;;  %2498 = vmatprep.subr.bf16.mxu1 %v3767_v38  ;;  %v3834_v37 = vld [vmem:[#allocation8 + $0x20] sm:$0xff]   ;;  %v3836_v38 = vld [vmem:[#allocation8 + $0x68] sm:$0xff]  }
 0x2a0   :  { %v3835_v8 = vld [vmem:[#allocation8 + $0xa0] sm:$0xff]  }
 0x2a2   :  { %2417 = vmatpush1.bf16.msra.mxu0 %v3762_v39  ;;  %2499 = vmatpush1.bf16.msra.mxu1 %v3765_v40  ;;  %v3837_v39 = vld [vmem:[#allocation8 + $0xe8] sm:$0xff]  }
 0x2a3   :  { %2418 = vmatprep.subr.bf16.mxu0 %v3770_v41  ;;  %2500 = vmatprep.subr.bf16.mxu1 %v3773_v42  ;;  %v3838_v40 = vld [vmem:[#allocation8 + $0x28] sm:$0xff]   ;;  %v3840_v42 = vld [vmem:[#allocation8 + $0x70] sm:$0xff]  }
 0x2a4   :  { %v3839_v41 = vld [vmem:[#allocation8 + $0xa8] sm:$0xff]  }
 0x2a6   :  { %2419 = vmatpush1.bf16.msra.mxu0 %v3768_v43  ;;  %2501 = vmatpush1.bf16.msra.mxu1 %v3771_v44  ;;  %v3841_v43 = vld [vmem:[#allocation8 + $0xf0] sm:$0xff]  }
 0x2a7   :  { %2420 = vmatprep.subr.bf16.mxu0 %v3776_v45  ;;  %2502 = vmatprep.subr.bf16.mxu1 %v3779_v46  ;;  %v3842_v44 = vld [vmem:[#allocation8 + $0x30] sm:$0xff]   ;;  %v3844_v46 = vld [vmem:[#allocation8 + $0x78] sm:$0xff]  }
 0x2a8   :  { %v3843_v45 = vld [vmem:[#allocation8 + $0xb0] sm:$0xff]  }
 0x2aa   :  { %2421 = vmatpush1.bf16.msra.mxu0 %v3774_v48  ;;  %2503 = vmatpush1.bf16.msra.mxu1 %v3777_v49  ;;  %v3845_v48 = vld [vmem:[#allocation8 + $0xf8] sm:$0xff]  }
 0x2ab   :  { %2422 = vmatprep.subr.bf16.mxu0 %v3782_v50  ;;  %2504 = vmatprep.subr.bf16.mxu1 %v3785_v51  ;;  %v3846_v49 = vld [vmem:[#allocation8 + $0x38] sm:$0xff]   ;;  %v1699_v51 = vld [vmem:[%s4179_s6] sm:$0xf] }
 0x2ac   :  { %v3847_v50 = vld [vmem:[#allocation8 + $0xb8] sm:$0xff]  }
 0x2ae   :  { %2423 = vmatpush1.bf16.msra.mxu0 %v3780_v53  ;;  %2505 = vmatpush1.bf16.msra.mxu1 %v3783_v54  ;;  %v1704_v53 = vrot.slane %v1699_v51, %v4108_v7  ;;  %v1712_v54 = vrot.slane %v1699_v51, %v4130_v22 }
 0x2af   :  { %2424 = vmatprep.subr.bf16.mxu0 %v3788_v55  ;;  %2506 = vmatprep.subr.bf16.mxu1 %v3791_v56  ;;  %v1708_v55 = vrot.slane %v1699_v51, %v4116_v9  ;;  %v1716_v56 = vrot.slane %v1699_v51, %v4123_v34 }
 0x2b2   :  { %2425 = vmatpush1.bf16.msra.mxu0 %v3786_v57  ;;  %2507 = vmatpush1.bf16.msra.mxu1 %v3789_v58 }
 0x2b3   :  { %2426 = vmatprep.subr.bf16.mxu0 %v3794_v59  ;;  %2508 = vmatprep.subr.bf16.mxu1 %v3797_v60 }
 0x2b6   :  { %2427 = vmatpush1.bf16.msra.mxu0 %v3792_v61  ;;  %2509 = vmatpush1.bf16.msra.mxu1 %v3795_v62 }
 0x2b7   :  { %2428 = vmatprep.subr.bf16.mxu0 %v3800_v63  ;;  %2510 = vmatprep.subr.bf16.mxu1 %v3803_v0 }
 0x2ba   :  { %2429 = vmatpush1.bf16.msra.mxu0 %v3798_v2  ;;  %2511 = vmatpush1.bf16.msra.mxu1 %v3801_v3 }
 0x2bb   :  { %2430 = vmatprep.subr.bf16.mxu0 %v3806_v4  ;;  %2512 = vmatprep.subr.bf16.mxu1 %v3809_v5 }
 0x2be   :  { %2431 = vmatpush1.bf16.msra.mxu0 %v3804_v11  ;;  %2513 = vmatpush1.bf16.msra.mxu1 %v3807_v12 }
 0x2bf   :  { %2432 = vmatprep.subr.bf16.mxu0 %v3812_v13  ;;  %2514 = vmatprep.subr.bf16.mxu1 %v3815_v14 }
 0x2c2   :  { %2433 = vmatpush1.bf16.msra.mxu0 %v3810_v47  ;;  %2515 = vmatpush1.bf16.msra.mxu1 %v3813_v16 }
 0x2c3   :  { %3257 = vmatprep.subr.bf16.mxu0 %v3816_v17  ;;  %3279 = vmatprep.subr.bf16.mxu1 %v3817_v18  ;;  %v3224_v18 = vld [vmem:[%s4181_s8] ss:$0 sm:$0xff] }
 0x2c5   :  { %2435 = vmatmul.mubr.bf16.vlgmr.msra.gmra.mrb[8].mxu0 %v1569_v21  ;;  %2517 = vmatmul.mubr.bf16.vlgmr.msra.gmra.mrb[8].mxu1 %v1569_v21 }
 0x2c6   :  { %3258 = vmatpush3.bf16.msra.mxu0 %v3818_v52  ;;  %3280 = vmatpush3.bf16.msra.mxu1 %v3819_v20 }
 0x2c7   :  { %3259 = vmatprep.subr.bf16.mxu0 %v3820_v23  ;;  %3281 = vmatprep.subr.bf16.mxu1 %v3821_v24 }
 0x2ca   :  { %3260 = vmatpush3.bf16.msra.mxu0 %v3822_v25  ;;  %3282 = vmatpush3.bf16.msra.mxu1 %v3823_v26 }
 0x2cb   :  { %3261 = vmatprep.subr.bf16.mxu0 %v3824_v27  ;;  %3283 = vmatprep.subr.bf16.mxu1 %v3825_v28 }
 0x2ce   :  { %3262 = vmatpush3.bf16.msra.mxu0 %v3826_v29  ;;  %3284 = vmatpush3.bf16.msra.mxu1 %v3827_v30 }
 0x2cf   :  { %3263 = vmatprep.subr.bf16.mxu0 %v3828_v6  ;;  %3285 = vmatprep.subr.bf16.mxu1 %v3829_v31 }
 0x2d2   :  { %3264 = vmatpush3.bf16.msra.mxu0 %v3830_v32  ;;  %3286 = vmatpush3.bf16.msra.mxu1 %v3831_v33 }
 0x2d3   :  { %3265 = vmatprep.subr.bf16.mxu0 %v3832_v35  ;;  %3287 = vmatprep.subr.bf16.mxu1 %v3833_v36 }
 0x2d6   :  { %3266 = vmatpush3.bf16.msra.mxu0 %v3834_v37  ;;  %3288 = vmatpush3.bf16.msra.mxu1 %v3835_v8 }
 0x2d7   :  { %3267 = vmatprep.subr.bf16.mxu0 %v3836_v38  ;;  %3289 = vmatprep.subr.bf16.mxu1 %v3837_v39 }
 0x2da   :  { %3268 = vmatpush3.bf16.msra.mxu0 %v3838_v40  ;;  %3290 = vmatpush3.bf16.msra.mxu1 %v3839_v41 }
 0x2db   :  { %3269 = vmatprep.subr.bf16.mxu0 %v3840_v42  ;;  %3291 = vmatprep.subr.bf16.mxu1 %v3841_v43 }
 0x2de   :  { %3270 = vmatpush3.bf16.msra.mxu0 %v3842_v44  ;;  %3292 = vmatpush3.bf16.msra.mxu1 %v3843_v45 }
 0x2df   :  { %3271 = vmatprep.subr.bf16.mxu0 %v3844_v46  ;;  %3293 = vmatprep.subr.bf16.mxu1 %v3845_v48 }
 0x2e2   :  { %3272 = vmatpush3.bf16.msra.mxu0 %v3846_v49  ;;  %3294 = vmatpush3.bf16.msra.mxu1 %v3847_v50 }
 0x398   :  { %v2436_v57 = vpop.f32.mrb[8].mxu0  ;;  %v2518_v58 = vpop.f32.mrb[8].mxu1 }
 0x399   :  { %v3305_v59 = vadd.f32 %v2436_v57, %v1704_v53  ;;  %v3307_v60 = vadd.f32 %v2518_v58, %v1712_v54  ;;  %v2438_v61 = vpop.f32.mrb[9].mxu0  ;;  %v2520_v62 = vpop.f32.mrb[9].mxu1 }
 0x39a   :  { %v3306_v63 = vadd.f32 %v2438_v61, %v1708_v55  ;;  %v3308_v0 = vadd.f32 %v2520_v62, %v1716_v56  ;;  %v2440_v1 = vpop.f32.mrb[10].mxu0  ;;  %v2522_v2 = vpop.f32.mrb[10].mxu1 }
 0x39b   :  { %vm2525_vm8 = vcmp.gt.f32.partialorder %v3305_v59, 0.0  ;;  %v2529_v3 = vmul.f32 0.1, %v3305_v59  ;;  %vm2527_vm9 = vcmp.gt.f32.partialorder %v3307_v60, 0.0  ;;  %v2531_v7 = vmul.f32 0.1, %v3307_v60 }
 0x39c   :  { %vm2526_vm10 = vcmp.gt.f32.partialorder %v3306_v63, 0.0  ;;  %v2530_v22 = vmul.f32 0.1, %v3306_v63  ;;  %vm2528_vm11 = vcmp.gt.f32.partialorder %v3308_v0, 0.0  ;;  %v2532_v9 = vmul.f32 0.1, %v3308_v0 }
 0x39d   :  { %v2533_v4 = vsel %vm2525_vm8, %v3305_v59, %v2529_v3  ;;  %v2535_v34 = vsel %vm2527_vm9, %v3307_v60, %v2531_v7  ;;  %v2441_v5 = vpop.f32.mrb[11].mxu0  ;;  %v2523_v10 = vpop.f32.mrb[11].mxu1 }
 0x39e   :  { %v2534_v11 = vsel %vm2526_vm10, %v3306_v63, %v2530_v22  ;;  %v2536_v12 = vsel %vm2528_vm11, %v3308_v0, %v2532_v9  ;;  %v2537_v15 = vpack.c.bf16 %v2533_v4, %v2533_v4  ;;  %v2539_v47 = vpack.c.bf16 %v2535_v34, %v2535_v34 }
 0x39f   :  { %v2538_v13 = vpack.c.bf16 %v2534_v11, %v2534_v11  ;;  %v2540_v14 = vpack.c.bf16 %v2536_v12, %v2536_v12 }
 0x3a1   :  { %2836 = vmatprep.mubr.bf16.mxu0 %v2538_v13  ;;  %2876 = vmatprep.mubr.bf16.mxu1 %v2540_v14 }
 0x3a2   :  { %2837 = vmatmul.mubr.bf16.vlgmr.msra.gmra.mrb[12].mxu0 %v2537_v15  ;;  %2877 = vmatmul.mubr.bf16.vlgmr.msra.gmra.mrb[12].mxu1 %v2539_v47 }
 0x475   :  { %v3273_v16 = vpop.f32.mrb[12].mxu0  ;;  %v3295_v17 = vpop.f32.mrb[12].mxu1 }
 0x476   :  { %v3274_v19 = vpop.f32.mrb[13].mxu0  ;;  %v3296_v52 = vpop.f32.mrb[13].mxu1 }
 0x477   :  { %v3275_v20 = vadd.f32 %v3274_v19, %v3273_v16  ;;  %v3297_v21 = vadd.f32 %v3296_v52, %v3295_v17  ;;  %v3276_v23 = vpop.f32.mrb[14].mxu0  ;;  %v3298_v24 = vpop.f32.mrb[14].mxu1 }
 0x478   :  { %v3277_v25 = vpop.f32.mrb[15].mxu0  ;;  %v3299_v26 = vpop.f32.mrb[15].mxu1 }
 0x479   :  { %v2839_v27 = vadd.f32 %v3275_v20, %v3224_v18 }
 0x47b   :  { %v2879_v28 = vadd.f32 %v3297_v21, %v2839_v27 }
 0x47d   :  { %2884 = vst [vmem:[#allocation10] sm:$0xff] %v2879_v28 }
 0x47e   :  { %3947 = shalt.err (!%p3944_p8)
}
 0x47f   :  { %s3948_s1 = scalar_lea.hbm %s4182_s9, 128 }
 0x480   :  { %p3949_p9 = scmp.ne.s32.totalorder %s4182_s9, %s3948_s1  ;;  %p3952_p10 = scmp.lt.u32.totalorder %s3948_s1, %s4182_s9 }
 0x482   :  { %p3954_p11 = pnand %p3952_p10, %p3949_p9 }
 0x484   :  { %3957 = shalt.err (!%p3954_p11)
}
 0x485   :  { %2894 = dma.vmem_to_hbm [thread:$0]  %s2892_s24, 128, %s4182_s9, [#allocation4]  }
 0x486   :  { %3964 = dma.done.wait [#allocation4], 128  }
 0x487   :  { %3965 = vsyncadd [#allocation4], 4294967168 }
 0x488   :  { %2898 = vsyncpa [#allocation3], 1 }
 0x489   :  { %2899 = vsyncpa [#allocation6], 1 }
 0x48a   :  { %2900 = vsyncpa [#allocation9], 1 }
 0x48b   :  { %2901 = vsyncpa [#allocation4], 1 }

</bundles_post_ra>
